<compile_context>
chip_gen: v5e
topology: v5e:2x2
jax: 0.10.0
libtpu: 0.0.40
codegen_flags: <defaults>
</compile_context>

<pallas_src>
import functools

import jax
import jax.numpy as jnp
from jax.experimental import pallas as pl
from jax.experimental.pallas import tpu as pltpu


def _round_up(x, m):
    return ((x + m - 1) // m) * m


def _mlp_fused_kernel(x_ref, *refs, layer_sizes, eps, matmul_dtype):
    """Whole-MLP fused kernel.

    refs = (w0, pack0, w1, pack1, ..., out_ref), pack = [bias; gamma; beta] (3, d_pad).
    Hidden activations are [TB, d_pad] (d_pad = 128-multiple); padded lanes of every
    hidden activation are exactly 0 (zero-padded weights/bias/gamma/beta), so LayerNorm
    statistics only need masking on the centered term.
    """
    out_ref = refs[-1]
    param_refs = refs[:-1]
    n_layers = len(layer_sizes) - 1
    d_pads = [param_refs[2 * li].shape[1] for li in range(n_layers)]

    # Hoist lane masks out of the unrolled layer loop (JAX does not CSE broadcast_in_dim).
    masks = {}
    for li in range(n_layers):
        d_true, d_pad = layer_sizes[li + 1], d_pads[li]
        if d_true < d_pad and (d_pad, d_true) not in masks:
            lane = jax.lax.broadcasted_iota(jnp.int32, (1, d_pad), 1)
            masks[(d_pad, d_true)] = lane < d_true

    h = x_ref[...]                                            # [TB, d_in_true], bf16
    for li in range(n_layers):
        w_ref = param_refs[2 * li]
        p_ref = param_refs[2 * li + 1]
        d_true, d_pad = layer_sizes[li + 1], d_pads[li]

        # Linear: bf16 MXU matmul with f32 accumulation; bias add in f32.
        lhs = h if h.dtype == matmul_dtype else h.astype(matmul_dtype)
        y = jnp.dot(lhs, w_ref[...],
                    preferred_element_type=jnp.float32) + p_ref[0:1, :]

        if li != n_layers - 1:                                # hidden layers only
            y = jnp.maximum(y, 0.0)

        # LayerNorm over the true feature width. Padded lanes of y are exactly 0
        # (zero-padded weight columns + bias), so the mean needs no mask.
        inv_d = jnp.float32(1.0 / d_true)
        mean = jnp.sum(y, axis=-1, keepdims=True) * inv_d
        if d_true < d_pad:
            centered = jnp.where(masks[(d_pad, d_true)], y - mean, 0.0)
        else:
            centered = y - mean
        var = jnp.sum(centered * centered, axis=-1, keepdims=True) * inv_d
        inv_std = jax.lax.rsqrt(var + eps)
        # gamma/beta are zero-padded, so padded lanes of h stay exactly 0.
        h = centered * inv_std * p_ref[1:2, :] + p_ref[2:3, :]

    out_ref[...] = h                                          # [TB, d_out_true], f32


def vanilla_mlp_forward(x, params, layer_sizes, *, tile_b=128,
                        matmul_dtype=jnp.bfloat16, eps=1e-5):
    """Runs the whole MLP in one fused Pallas kernel.

    x:      [B, layer_sizes[0]] float32
    params: list of (w [d_in, d_out] f32, b [1, d_out], gamma [1, d_out], beta [1, d_out])

    tile_b: batch rows per grid step. Default 128 gives an even >=2-step parallel grid
            for v7x's two TensorCores; on single-TC v5e/v6e you may pass tile_b=B to
            use one big tile (per-step overhead ~0.35us is otherwise negligible here).
    """
    B = x.shape[0]
    n_layers = len(params)
    assert n_layers == len(layer_sizes) - 1

    # Feature widths seen inside the kernel:
    #   input width       -> true size (contraction of layer 0; no HBM padding)
    #   hidden widths      -> padded to 128 (lane-dense chained matmuls)
    #   final output width -> true size (full-array last dim; avoids write amplification)
    pdims = [layer_sizes[0]]
    for d in layer_sizes[1:-1]:
        pdims.append(_round_up(d, 128))
    pdims.append(layer_sizes[-1])

    # Batch tiling: TB rows per grid step (multiple of 8 sublanes).
    tb = _round_up(min(tile_b, _round_up(B, 8)), 8)
    b_pad = _round_up(B, tb)

    # x is cast to the matmul dtype in the wrapper (half the DMA bytes, no in-kernel cast).
    xp = x.astype(matmul_dtype)
    if b_pad != B:
        xp = jnp.pad(xp, ((0, b_pad - B), (0, 0)))

    inputs = [xp]
    in_specs = [pl.BlockSpec((tb, pdims[0]), lambda i: (i, 0))]
    for li, (w, b, g, beta) in enumerate(params):
        d_in, d_out = w.shape
        pi, po = pdims[li], pdims[li + 1]
        wp = jnp.pad(w, ((0, pi - d_in), (0, po - d_out))).astype(matmul_dtype)
        pack = jnp.concatenate([b, g, beta], axis=0)                 # (3, d_out)
        packp = jnp.pad(pack, ((0, 0), (0, po - d_out))).astype(jnp.float32)
        inputs += [wp, packp]
        # Weights / packed per-feature params stay resident in VMEM across batch tiles.
        in_specs += [
            pl.BlockSpec((pi, po), lambda i: (0, 0)),
            pl.BlockSpec((3, po), lambda i: (0, 0)),
        ]

    kernel = functools.partial(_mlp_fused_kernel, layer_sizes=tuple(layer_sizes),
                               eps=eps, matmul_dtype=matmul_dtype)

    # Cost estimate from TRUE layer sizes (advisory for XLA scheduling).
    flops = 2 * B * sum(layer_sizes[i] * layer_sizes[i + 1] for i in range(n_layers))
    bytes_accessed = int(sum(int(a.size) * a.dtype.itemsize for a in inputs)
                         + b_pad * pdims[-1] * 4)
    cost = pl.CostEstimate(flops=flops, transcendentals=B * n_layers,
                           bytes_accessed=bytes_accessed)

    # VMEM budget: double-buffered activation/output tiles + (conservatively
    # double-buffered) resident weights and param packs, with 2x headroom.
    # NOTE: for large hidden widths on v7x (64 MiB physical VMEM), single-buffer the
    # constant-index weight specs (pipeline_mode=pl.Buffered(1)) or stream weights over
    # an "arbitrary" reduction grid axis with a pl.when-initialized f32 accumulator.
    msize = jnp.dtype(matmul_dtype).itemsize
    resident = 2 * tb * pdims[0] * msize + 2 * tb * pdims[-1] * 4
    for li in range(n_layers):
        resident += 2 * (pdims[li] * pdims[li + 1] * msize + 3 * pdims[li + 1] * 4)
    vmem_limit = int(min(32 << 20, max(2 * resident, 8 << 20)))

    out_padded = pl.pallas_call(
        kernel,
        out_shape=jax.ShapeDtypeStruct((b_pad, pdims[-1]), jnp.float32),
        grid=(b_pad // tb,),
        in_specs=in_specs,
        out_specs=pl.BlockSpec((tb, pdims[-1]), lambda i: (i, 0)),
        compiler_params=pltpu.CompilerParams(
            dimension_semantics=("parallel",),
            vmem_limit_bytes=vmem_limit),
        cost_estimate=cost,
    )(*inputs)

    return out_padded[:B] if b_pad != B else out_padded


def init_vanilla_mlp_params(key, layer_sizes):
    """Parameter init mirroring the PyTorch module's shapes.

    nn.Linear(size_in, size_out): weight [size_out, size_in] (stored transposed here
    as [size_in, size_out]), bias [size_out]; U(-1/sqrt(fan_in), 1/sqrt(fan_in)).
    nn.LayerNorm(size_out): gamma = ones, beta = zeros (PyTorch default).
    """
    params = []
    for size_in, size_out in zip(layer_sizes[:-1], layer_sizes[1:]):
        key, kw, kb = jax.random.split(key, 3)
        bound = 1.0 / jnp.sqrt(jnp.float32(size_in))
        w = jax.random.uniform(kw, (size_in, size_out), jnp.float32, -bound, bound)
        b = jax.random.uniform(kb, (1, size_out), jnp.float32, -bound, bound)
        gamma = jnp.ones((1, size_out), jnp.float32)
        beta = jnp.zeros((1, size_out), jnp.float32)
        params.append((w, b, gamma, beta))
    return params


def vanilla_mlp_reference(x, params, matmul_dtype=jnp.float32, eps=1e-5):
    """Pure-JAX reference. matmul_dtype selects the matmul input precision so the
    kernel (bf16 MXU inputs, f32 accumulate) can be checked tightly."""
    n = len(params)
    h = x
    for i, (w, b, g, beta) in enumerate(params):
        y = jnp.dot(h.astype(matmul_dtype), w.astype(matmul_dtype),
                    preferred_element_type=jnp.float32) + b
        if i != n - 1:
            y = jnp.maximum(y, 0.0)
        mean = jnp.mean(y, axis=-1, keepdims=True)
        var = jnp.mean((y - mean) ** 2, axis=-1, keepdims=True)
        h = (y - mean) * jax.lax.rsqrt(var + eps) * g + beta
    return h


if __name__ == "__main__":
    key = jax.random.PRNGKey(0)
    key, kx = jax.random.split(key)

    layer_sizes = [16, 32, 32, 8]   # small MLP consistent with the module
    batch = 256                     # 2 batch tiles of 128 -> both v7x TCs get work

    x = jax.random.normal(kx, (batch, layer_sizes[0]), jnp.float32)
    params = init_vanilla_mlp_params(key, layer_sizes)

    out = vanilla_mlp_forward(x, params, layer_sizes)
    out = jax.block_until_ready(out)
    assert out.shape == (batch, layer_sizes[-1])

    # Tight check vs. a reference using the same bf16-input / f32-accum matmul.
    ref_bf16 = vanilla_mlp_reference(x, params, matmul_dtype=jnp.bfloat16)
    assert jnp.allclose(out, ref_bf16, atol=1e-2, rtol=1e-2), "mismatch vs bf16 reference"

    # Loose sanity check vs. full-f32 PyTorch-equivalent math (bf16 rounding only).
    ref_f32 = vanilla_mlp_reference(x, params, matmul_dtype=jnp.float32)
    assert jnp.allclose(out, ref_f32, atol=1e-1, rtol=1e-1), "mismatch vs f32 reference"

    print("KERNEL_OK")
</pallas_src>

<mosaic_0001>
module attributes {stable_mosaic.version = 11 : i64} {
  func.func @_mlp_fused_kernel(%arg0: i32, %arg1: memref<128x16xbf16, #tpu.memory_space<vmem>>, %arg2: memref<16x128xbf16, #tpu.memory_space<vmem>>, %arg3: memref<3x128xf32, #tpu.memory_space<vmem>>, %arg4: memref<128x128xbf16, #tpu.memory_space<vmem>>, %arg5: memref<3x128xf32, #tpu.memory_space<vmem>>, %arg6: memref<128x8xbf16, #tpu.memory_space<vmem>>, %arg7: memref<3x8xf32, #tpu.memory_space<vmem>>, %arg8: memref<128x8xf32, #tpu.memory_space<vmem>>) attributes {dimension_semantics = [#tpu.dimension_semantics<parallel>], iteration_bounds = array<i64: 2>, scalar_prefetch = 0 : i64, scratch_operands = 0 : i64, tpu.core_type = #tpu.core_type<tc>, window_params = [{transform_indices = @transform_0, window_bounds = array<i64: 128, 16>}, {pipeline_mode = #tpu.pipeline_mode<synchronous>, transform_indices = @transform_1, window_bounds = array<i64: 16, 128>}, {pipeline_mode = #tpu.pipeline_mode<synchronous>, transform_indices = @transform_2, window_bounds = array<i64: 3, 128>}, {pipeline_mode = #tpu.pipeline_mode<synchronous>, transform_indices = @transform_3, window_bounds = array<i64: 128, 128>}, {pipeline_mode = #tpu.pipeline_mode<synchronous>, transform_indices = @transform_4, window_bounds = array<i64: 3, 128>}, {pipeline_mode = #tpu.pipeline_mode<synchronous>, transform_indices = @transform_5, window_bounds = array<i64: 128, 8>}, {pipeline_mode = #tpu.pipeline_mode<synchronous>, transform_indices = @transform_6, window_bounds = array<i64: 3, 8>}, {transform_indices = @transform_7, window_bounds = array<i64: 128, 8>}]} {
    %0 = tpu.iota {dimensions = array<i32: 1>} : vector<1x128xi32>
    %c32_i32 = arith.constant 32 : i32
    %1 = vector.broadcast %c32_i32 : i32 to vector<1x128xi32>
    %2 = arith.cmpi slt, %0, %1 : vector<1x128xi32>
    %c0 = arith.constant 0 : index
    %c0_0 = arith.constant 0 : index
    %3 = vector.load %arg1[%c0, %c0_0] : memref<128x16xbf16, #tpu.memory_space<vmem>>, vector<128x16xbf16>
    %c0_1 = arith.constant 0 : index
    %c0_2 = arith.constant 0 : index
    %4 = vector.load %arg2[%c0_1, %c0_2] : memref<16x128xbf16, #tpu.memory_space<vmem>>, vector<16x128xbf16>
    %cst = arith.constant dense<0.000000e+00> : vector<128x128xf32>
    %5 = tpu.matmul %3, %4, %cst {dimension_numbers = #tpu.dot_dimension_numbers<[1], [0], [0], [1], [0, 0, 1, 1], [], []>} : vector<128x16xbf16>, vector<16x128xbf16>, vector<128x128xf32> -> vector<128x128xf32>
    %c0_3 = arith.constant 0 : index
    %c0_4 = arith.constant 0 : index
    %6 = vector.load %arg3[%c0_3, %c0_4] : memref<3x128xf32, #tpu.memory_space<vmem>>, vector<1x128xf32>
    %7 = vector.broadcast %6 : vector<1x128xf32> to vector<128x128xf32>
    %8 = arith.addf %5, %7 : vector<128x128xf32>
    %cst_5 = arith.constant 0.000000e+00 : f32
    %9 = vector.broadcast %cst_5 : f32 to vector<128x128xf32>
    %10 = arith.maximumf %8, %9 : vector<128x128xf32>
    %cst_6 = arith.constant dense<0.000000e+00> : vector<128xf32>
    %11 = vector.multi_reduction <add>, %10, %cst_6 [1] : vector<128x128xf32> to vector<128xf32>
    %12 = vector.shape_cast %11 : vector<128xf32> to vector<128x1xf32>
    %cst_7 = arith.constant 3.125000e-02 : f32
    %13 = vector.broadcast %cst_7 : f32 to vector<128x1xf32>
    %14 = arith.mulf %12, %13 : vector<128x1xf32>
    %15 = vector.broadcast %14 : vector<128x1xf32> to vector<128x128xf32>
    %16 = arith.subf %10, %15 : vector<128x128xf32>
    %cst_8 = arith.constant 0.000000e+00 : f32
    %17 = vector.shape_cast %2 : vector<1x128xi1> to vector<1x128xi1>
    %18 = vector.broadcast %17 : vector<1x128xi1> to vector<128x128xi1>
    %19 = vector.broadcast %cst_8 : f32 to vector<128x128xf32>
    %20 = arith.select %18, %16, %19 : vector<128x128xi1>, vector<128x128xf32>
    %21 = arith.mulf %20, %20 : vector<128x128xf32>
    %cst_9 = arith.constant dense<0.000000e+00> : vector<128xf32>
    %22 = vector.multi_reduction <add>, %21, %cst_9 [1] : vector<128x128xf32> to vector<128xf32>
    %23 = vector.shape_cast %22 : vector<128xf32> to vector<128x1xf32>
    %cst_10 = arith.constant 3.125000e-02 : f32
    %24 = vector.broadcast %cst_10 : f32 to vector<128x1xf32>
    %25 = arith.mulf %23, %24 : vector<128x1xf32>
    %cst_11 = arith.constant 9.99999974E-6 : f32
    %26 = vector.broadcast %cst_11 : f32 to vector<128x1xf32>
    %27 = arith.addf %25, %26 : vector<128x1xf32>
    %28 = math.rsqrt %27 : vector<128x1xf32>
    %29 = vector.broadcast %28 : vector<128x1xf32> to vector<128x128xf32>
    %30 = arith.mulf %20, %29 : vector<128x128xf32>
    %c1 = arith.constant 1 : index
    %c0_12 = arith.constant 0 : index
    %31 = vector.load %arg3[%c1, %c0_12] : memref<3x128xf32, #tpu.memory_space<vmem>>, vector<1x128xf32>
    %32 = vector.broadcast %31 : vector<1x128xf32> to vector<128x128xf32>
    %33 = arith.mulf %30, %32 : vector<128x128xf32>
    %c2 = arith.constant 2 : index
    %c0_13 = arith.constant 0 : index
    %34 = vector.load %arg3[%c2, %c0_13] : memref<3x128xf32, #tpu.memory_space<vmem>>, vector<1x128xf32>
    %35 = vector.broadcast %34 : vector<1x128xf32> to vector<128x128xf32>
    %36 = arith.addf %33, %35 : vector<128x128xf32>
    %37 = arith.truncf %36 : vector<128x128xf32> to vector<128x128xbf16>
    %c0_14 = arith.constant 0 : index
    %c0_15 = arith.constant 0 : index
    %38 = vector.load %arg4[%c0_14, %c0_15] : memref<128x128xbf16, #tpu.memory_space<vmem>>, vector<128x128xbf16>
    %cst_16 = arith.constant dense<0.000000e+00> : vector<128x128xf32>
    %39 = tpu.matmul %37, %38, %cst_16 {dimension_numbers = #tpu.dot_dimension_numbers<[1], [0], [0], [1], [0, 0, 1, 1], [], []>} : vector<128x128xbf16>, vector<128x128xbf16>, vector<128x128xf32> -> vector<128x128xf32>
    %c0_17 = arith.constant 0 : index
    %c0_18 = arith.constant 0 : index
    %40 = vector.load %arg5[%c0_17, %c0_18] : memref<3x128xf32, #tpu.memory_space<vmem>>, vector<1x128xf32>
    %41 = vector.broadcast %40 : vector<1x128xf32> to vector<128x128xf32>
    %42 = arith.addf %39, %41 : vector<128x128xf32>
    %cst_19 = arith.constant 0.000000e+00 : f32
    %43 = vector.broadcast %cst_19 : f32 to vector<128x128xf32>
    %44 = arith.maximumf %42, %43 : vector<128x128xf32>
    %cst_20 = arith.constant dense<0.000000e+00> : vector<128xf32>
    %45 = vector.multi_reduction <add>, %44, %cst_20 [1] : vector<128x128xf32> to vector<128xf32>
    %46 = vector.shape_cast %45 : vector<128xf32> to vector<128x1xf32>
    %cst_21 = arith.constant 3.125000e-02 : f32
    %47 = vector.broadcast %cst_21 : f32 to vector<128x1xf32>
    %48 = arith.mulf %46, %47 : vector<128x1xf32>
    %49 = vector.broadcast %48 : vector<128x1xf32> to vector<128x128xf32>
    %50 = arith.subf %44, %49 : vector<128x128xf32>
    %cst_22 = arith.constant 0.000000e+00 : f32
    %51 = vector.shape_cast %2 : vector<1x128xi1> to vector<1x128xi1>
    %52 = vector.broadcast %51 : vector<1x128xi1> to vector<128x128xi1>
    %53 = vector.broadcast %cst_22 : f32 to vector<128x128xf32>
    %54 = arith.select %52, %50, %53 : vector<128x128xi1>, vector<128x128xf32>
    %55 = arith.mulf %54, %54 : vector<128x128xf32>
    %cst_23 = arith.constant dense<0.000000e+00> : vector<128xf32>
    %56 = vector.multi_reduction <add>, %55, %cst_23 [1] : vector<128x128xf32> to vector<128xf32>
    %57 = vector.shape_cast %56 : vector<128xf32> to vector<128x1xf32>
    %cst_24 = arith.constant 3.125000e-02 : f32
    %58 = vector.broadcast %cst_24 : f32 to vector<128x1xf32>
    %59 = arith.mulf %57, %58 : vector<128x1xf32>
    %cst_25 = arith.constant 9.99999974E-6 : f32
    %60 = vector.broadcast %cst_25 : f32 to vector<128x1xf32>
    %61 = arith.addf %59, %60 : vector<128x1xf32>
    %62 = math.rsqrt %61 : vector<128x1xf32>
    %63 = vector.broadcast %62 : vector<128x1xf32> to vector<128x128xf32>
    %64 = arith.mulf %54, %63 : vector<128x128xf32>
    %c1_26 = arith.constant 1 : index
    %c0_27 = arith.constant 0 : index
    %65 = vector.load %arg5[%c1_26, %c0_27] : memref<3x128xf32, #tpu.memory_space<vmem>>, vector<1x128xf32>
    %66 = vector.broadcast %65 : vector<1x128xf32> to vector<128x128xf32>
    %67 = arith.mulf %64, %66 : vector<128x128xf32>
    %c2_28 = arith.constant 2 : index
    %c0_29 = arith.constant 0 : index
    %68 = vector.load %arg5[%c2_28, %c0_29] : memref<3x128xf32, #tpu.memory_space<vmem>>, vector<1x128xf32>
    %69 = vector.broadcast %68 : vector<1x128xf32> to vector<128x128xf32>
    %70 = arith.addf %67, %69 : vector<128x128xf32>
    %71 = arith.truncf %70 : vector<128x128xf32> to vector<128x128xbf16>
    %c0_30 = arith.constant 0 : index
    %c0_31 = arith.constant 0 : index
    %72 = vector.load %arg6[%c0_30, %c0_31] : memref<128x8xbf16, #tpu.memory_space<vmem>>, vector<128x8xbf16>
    %cst_32 = arith.constant dense<0.000000e+00> : vector<128x8xf32>
    %73 = tpu.matmul %71, %72, %cst_32 {dimension_numbers = #tpu.dot_dimension_numbers<[1], [0], [0], [1], [0, 0, 1, 1], [], []>} : vector<128x128xbf16>, vector<128x8xbf16>, vector<128x8xf32> -> vector<128x8xf32>
    %c0_33 = arith.constant 0 : index
    %c0_34 = arith.constant 0 : index
    %74 = vector.load %arg7[%c0_33, %c0_34] : memref<3x8xf32, #tpu.memory_space<vmem>>, vector<1x8xf32>
    %75 = vector.broadcast %74 : vector<1x8xf32> to vector<128x8xf32>
    %76 = arith.addf %73, %75 : vector<128x8xf32>
    %cst_35 = arith.constant dense<0.000000e+00> : vector<128xf32>
    %77 = vector.multi_reduction <add>, %76, %cst_35 [1] : vector<128x8xf32> to vector<128xf32>
    %78 = vector.shape_cast %77 : vector<128xf32> to vector<128x1xf32>
    %cst_36 = arith.constant 1.250000e-01 : f32
    %79 = vector.broadcast %cst_36 : f32 to vector<128x1xf32>
    %80 = arith.mulf %78, %79 : vector<128x1xf32>
    %81 = vector.broadcast %80 : vector<128x1xf32> to vector<128x8xf32>
    %82 = arith.subf %76, %81 : vector<128x8xf32>
    %83 = arith.mulf %82, %82 : vector<128x8xf32>
    %cst_37 = arith.constant dense<0.000000e+00> : vector<128xf32>
    %84 = vector.multi_reduction <add>, %83, %cst_37 [1] : vector<128x8xf32> to vector<128xf32>
    %85 = vector.shape_cast %84 : vector<128xf32> to vector<128x1xf32>
    %cst_38 = arith.constant 1.250000e-01 : f32
    %86 = vector.broadcast %cst_38 : f32 to vector<128x1xf32>
    %87 = arith.mulf %85, %86 : vector<128x1xf32>
    %cst_39 = arith.constant 9.99999974E-6 : f32
    %88 = vector.broadcast %cst_39 : f32 to vector<128x1xf32>
    %89 = arith.addf %87, %88 : vector<128x1xf32>
    %90 = math.rsqrt %89 : vector<128x1xf32>
    %91 = vector.broadcast %90 : vector<128x1xf32> to vector<128x8xf32>
    %92 = arith.mulf %82, %91 : vector<128x8xf32>
    %c1_40 = arith.constant 1 : index
    %c0_41 = arith.constant 0 : index
    %93 = vector.load %arg7[%c1_40, %c0_41] : memref<3x8xf32, #tpu.memory_space<vmem>>, vector<1x8xf32>
    %94 = vector.broadcast %93 : vector<1x8xf32> to vector<128x8xf32>
    %95 = arith.mulf %92, %94 : vector<128x8xf32>
    %c2_42 = arith.constant 2 : index
    %c0_43 = arith.constant 0 : index
    %96 = vector.load %arg7[%c2_42, %c0_43] : memref<3x8xf32, #tpu.memory_space<vmem>>, vector<1x8xf32>
    %97 = vector.broadcast %96 : vector<1x8xf32> to vector<128x8xf32>
    %98 = arith.addf %95, %97 : vector<128x8xf32>
    %c0_44 = arith.constant 0 : index
    %c0_45 = arith.constant 0 : index
    %99 = vector.load %arg8[%c0_44, %c0_45] : memref<128x8xf32, #tpu.memory_space<vmem>>, vector<128x8xf32>
    tpu.vector_store %arg8[%c0_44, %c0_45], %98 {strides = array<i32>} : memref<128x8xf32, #tpu.memory_space<vmem>>, vector<128x8xf32>,
    return
  }
  func.func @transform_0(%arg0: i32) -> (i32, i32) {
    %c0_i32 = arith.constant 0 : i32
    %c0_i32_0 = arith.constant 0 : i32
    return %arg0, %c0_i32 : i32, i32
  }
  func.func @transform_1(%arg0: i32) -> (i32, i32) {
    %c0_i32 = arith.constant 0 : i32
    %c0_i32_0 = arith.constant 0 : i32
    %c0_i32_1 = arith.constant 0 : i32
    return %c0_i32, %c0_i32_0 : i32, i32
  }
  func.func @transform_2(%arg0: i32) -> (i32, i32) {
    %c0_i32 = arith.constant 0 : i32
    %c0_i32_0 = arith.constant 0 : i32
    %c0_i32_1 = arith.constant 0 : i32
    return %c0_i32, %c0_i32_0 : i32, i32
  }
  func.func @transform_3(%arg0: i32) -> (i32, i32) {
    %c0_i32 = arith.constant 0 : i32
    %c0_i32_0 = arith.constant 0 : i32
    %c0_i32_1 = arith.constant 0 : i32
    return %c0_i32, %c0_i32_0 : i32, i32
  }
  func.func @transform_4(%arg0: i32) -> (i32, i32) {
    %c0_i32 = arith.constant 0 : i32
    %c0_i32_0 = arith.constant 0 : i32
    %c0_i32_1 = arith.constant 0 : i32
    return %c0_i32, %c0_i32_0 : i32, i32
  }
  func.func @transform_5(%arg0: i32) -> (i32, i32) {
    %c0_i32 = arith.constant 0 : i32
    %c0_i32_0 = arith.constant 0 : i32
    %c0_i32_1 = arith.constant 0 : i32
    return %c0_i32, %c0_i32_0 : i32, i32
  }
  func.func @transform_6(%arg0: i32) -> (i32, i32) {
    %c0_i32 = arith.constant 0 : i32
    %c0_i32_0 = arith.constant 0 : i32
    %c0_i32_1 = arith.constant 0 : i32
    return %c0_i32, %c0_i32_0 : i32, i32
  }
  func.func @transform_7(%arg0: i32) -> (i32, i32) {
    %c0_i32 = arith.constant 0 : i32
    %c0_i32_0 = arith.constant 0 : i32
    return %arg0, %c0_i32 : i32, i32
  }
}

</mosaic_0001>

<bundles_post_ra>
// kernel: tpu_custom_call.1
= control target key start
LH: loop header
LB: loop body
LE: loop exit
PB: predicated region body
PF: predicated region fallthrough
CT: control target
= control target key end

     0   :  { %s2232_s24 = smov 0   ;;  %s3335_s0 = inlined_call_operand.vmem [shape: bf16[256,16], index: 0, kind: input, shape index: {}]   ;;  %s3336_s1 = inlined_call_operand.vmem [shape: bf16[16,128], index: 1, kind: input, shape index: {}]   ;;  %s3337_s2 = inlined_call_operand.vmem [shape: f32[3,128], index: 2, kind: input, shape index: {}]   ;;  %s3338_s3 = inlined_call_operand.vmem [shape: bf16[128,128], index: 3, kind: input, shape index: {}]   ;;  %s3339_s4 = inlined_call_operand.vmem [shape: f32[3,128], index: 4, kind: input, shape index: {}]   ;;  %s3340_s5 = inlined_call_operand.vmem [shape: bf16[128,8], index: 5, kind: input, shape index: {}]   ;;  %s3341_s6 = inlined_call_operand.vmem [shape: f32[3,8], index: 6, kind: input, shape index: {}]   ;;  %s3342_s7 = inlined_call_operand.vmem [shape: f32[256,8], index: 7, kind: output, shape index: {}]  }
   0x1 LB: > { %s1911_s25 = sadd.s32 4294967295, %s2190_s24   ;;  %p1915_p0 = scmp.ge.s32.totalorder %s2190_s24, 1  ;;  %s2190_s24 = sphi %s2232_s24, %s17_s24  }
   0x2   : > { %p238_p1 = scmp.lt.s32.totalorder %s2190_s24, 3 }
   0x4   : > { %p239_p2 = pnand %p1915_p0, %p238_p1 }
   0x5   : > { %s1916_s28 = sshll.u32 (!%p239_p2), %s1911_s25, 4 }
   0x6   : > { %242 = sbr.rel (%p239_p2) target bundleno = 1405 (0x57d), region = 48  ;;  %p271_p3 = scmp.lt.s32.totalorder (!%p239_p2), %s1916_s28, 31 }
   0xb   : > { %v2038_v0 = vld [vmem:[%s3336_s1] sm:$0xff]  ;;  %s3362_s28 = smov (!%p271_p3, %s1916_s28), 31  ;;  %vm352_vm0 = vcmask 130048   ;;  %v283_v42 = vlaneseq }
   0xc   : > { %384 = vmatpush.bf16.msra.mxu0 %v2038_v0  ;;  %s1917_s29 = sshll.u32 %s3362_s28, 2  ;;  %v2260_v9 = vld [vmem:[%s3337_s2] ss:$0 sm:$0xff]  ;;  %s1919_s16 = sshll.u32 %s3362_s28, 3 }
   0xd   : > { %s274_s9 = scalar_lea.vmem %s3335_s0, %s1917_s29  ;;  %v2303_v44 = vand.u32 127, %v283_v42  ;;  %s3228_s28 = scalar_lea.vmem %s3342_s7, %s1919_s16 }
   0xe   : > { %v2030_v1 = vld [vmem:[%s274_s9] sm:$0xff]  ;;  %v2031_v2 = vld [vmem:[%s274_s9 + $0x8] sm:$0xff]  ;;  %v2032_v3 = vld [vmem:[%s274_s9 + $0x10] sm:$0xff] }
   0xf   : > { %1956 = vmatmul.msk.bf16.vlgmr.msra.gmra.mxu0 %vm352_vm0, %v2030_v1  ;;  %v2033_v4 = vld [vmem:[%s274_s9 + $0x18] sm:$0xff]  ;;  %v2034_v5 = vld [vmem:[%s274_s9 + $0x20] sm:$0xff]  ;;  %v2035_v6 = vld [vmem:[%s274_s9 + $0x28] sm:$0xff]  ;;  %vm285_vm1 = vcmp.lt.s32.totalorder %v2303_v44, 32 }
  0x10   : > { %v2036_v7 = vld [vmem:[%s274_s9 + $0x30] sm:$0xff]  ;;  %v2037_v8 = vld [vmem:[%s274_s9 + $0x38] sm:$0xff] }
  0x1f   : > { %1957 = vmatmul.msk.bf16.gmra.mxu0 %vm352_vm0, %v2031_v2 }
  0x2f   : > { %1958 = vmatmul.msk.bf16.gmra.mxu0 %vm352_vm0, %v2032_v3 }
  0x3f   : > { %1959 = vmatmul.msk.bf16.gmra.mxu0 %vm352_vm0, %v2033_v4 }
  0x4f   : > { %1960 = vmatmul.msk.bf16.gmra.mxu0 %vm352_vm0, %v2034_v5 }
  0x5f   : > { %1961 = vmatmul.msk.bf16.gmra.mxu0 %vm352_vm0, %v2035_v6 }
  0x6f   : > { %1962 = vmatmul.msk.bf16.gmra.mxu0 %vm352_vm0, %v2036_v7 }
  0x7f   : > { %1963 = vmatmul.msk.bf16.gmra.mxu0 %vm352_vm0, %v2037_v8 }
  0x8c   : > { %v386_v10 = vpop.f32.mrf.mxu0 }
  0x8d   : > { %v387_v11 = vadd.f32 %v2260_v9, %v386_v10 }
  0x8f   : > { %v426_v12 = vmax.f32 %v387_v11, 0.0 }
  0x91   : > { %442 = vadd.xlane.f32.xlu0 %v426_v12 }
  0x94   : > { %v388_v13 = vpop.f32.mrf.mxu0 }
  0x95   : > { %v389_v14 = vadd.f32 %v2260_v9, %v388_v13 }
  0x97   : > { %v427_v15 = vmax.f32 %v389_v14, 0.0 }
  0x99   : > { %444 = vadd.xlane.f32.xlu0 %v427_v15 }
  0x9c   : > { %v391_v16 = vpop.f32.mrf.mxu0 }
  0x9d   : > { %v392_v17 = vadd.f32 %v2260_v9, %v391_v16 }
  0x9f   : > { %v428_v18 = vmax.f32 %v392_v17, 0.0 }
  0xa1   : > { %446 = vadd.xlane.f32.xlu1 %v428_v18 }
  0xa4   : > { %v393_v19 = vpop.f32.mrf.mxu0 }
  0xa5   : > { %v2266_v20 = vadd.f32 %v2260_v9, %v393_v19 }
  0xa7   : > { %v429_v21 = vmax.f32 %v2266_v20, 0.0 }
  0xa9   : > { %448 = vadd.xlane.f32.xlu1 %v429_v21 }
  0xac   : > { %v396_v22 = vpop.f32.mrf.mxu0 }
  0xad   : > { %v2272_v23 = vadd.f32 %v2260_v9, %v396_v22 }
  0xaf   : > { %v430_v24 = vmax.f32 %v2272_v23, 0.0 }
  0xb1   : > { %450 = vadd.xlane.f32.xlu2 %v430_v24 }
  0xb4   : > { %v398_v25 = vpop.f32.mrf.mxu0 }
  0xb5   : > { %v2278_v26 = vadd.f32 %v2260_v9, %v398_v25 }
  0xb7   : > { %v431_v27 = vmax.f32 %v2278_v26, 0.0 }
  0xb9   : > { %452 = vadd.xlane.f32.xlu2 %v431_v27 }
  0xbc   : > { %v401_v28 = vpop.f32.mrf.mxu0 }
  0xbd   : > { %v2284_v29 = vadd.f32 %v2260_v9, %v401_v28 }
  0xbf   : > { %v432_v30 = vmax.f32 %v2284_v29, 0.0 }
  0xc1   : > { %454 = vadd.xlane.f32.xlu2 %v432_v30 }
  0xc4   : > { %v403_v31 = vpop.f32.mrf.mxu0 }
  0xc5   : > { %v2322_v56 = vadd.f32 %v2260_v9, %v403_v31 }
  0xc7   : > { %v433_v60 = vmax.f32 %v2322_v56, 0.0 }
  0xcc   : > { %v406_v32 = vpop.f32.mrf.mxu0 }
  0xcd   : > { %v2298_v40 = vadd.f32 %v2260_v9, %v406_v32 }
  0xcf   : > { %v434_v43 = vmax.f32 %v2298_v40, 0.0 }
  0xd4   : > { %v408_v33 = vpop.f32.mrf.mxu0 }
  0xd5   : > { %v2349_v7 = vadd.f32 %v2260_v9, %v408_v33  ;;  %v2046_v33 = vld [vmem:[%s3338_s3 + $0x38] sm:$0xff] }
  0xd6   : > { %890 = vmatpush.bf16.msra.mxu1 %v2046_v33  ;;  %2055 = vmatpush.bf16.msra.mxu3 %v2046_v33 }
  0xd7   : > { %v435_v11 = vmax.f32 %v2349_v7, 0.0 }
  0xdc   : > { %v411_v34 = vpop.f32.mrf.mxu0 }
  0xdd   : > { %v2319_v53 = vadd.f32 %v2260_v9, %v411_v34  ;;  %v2045_v34 = vld [vmem:[%s3338_s3 + $0x30] sm:$0xff] }
  0xde   : > { %891 = vmatpush.bf16.msra.mxu1 %v2045_v34  ;;  %2056 = vmatpush.bf16.msra.mxu3 %v2045_v34 }
  0xdf   : > { %v436_v57 = vmax.f32 %v2319_v53, 0.0 }
  0xe4   : > { %v2289_v35 = vpop.f32.mrf.mxu0 }
  0xe5   : > { %v2378_v22 = vadd.f32 %v2260_v9, %v2289_v35  ;;  %v2044_v35 = vld [vmem:[%s3338_s3 + $0x28] sm:$0xff] }
  0xe6   : > { %892 = vmatpush.bf16.msra.mxu1 %v2044_v35  ;;  %2057 = vmatpush.bf16.msra.mxu3 %v2044_v35 }
  0xe7   : > { %v437_v25 = vmax.f32 %v2378_v22, 0.0 }
  0xec   : > { %v416_v36 = vpop.f32.mrf.mxu0 }
  0xed   : > { %v2337_v0 = vadd.f32 %v2260_v9, %v416_v36 }
  0xef   : > { %v438_v3 = vmax.f32 %v2337_v0, 0.0 }
  0xf4   : > { %v418_v37 = vpop.f32.mrf.mxu0 }
  0xf5   : > { %v2292_v38 = vadd.f32 %v2260_v9, %v418_v37 }
  0xf7   : > { %v439_v39 = vmax.f32 %v2292_v38, 0.0  ;;  %v2042_v38 = vld [vmem:[%s3338_s3 + $0x18] sm:$0xff] }
  0xf9   : > { %468 = vadd.xlane.f32.xlu2 %v439_v39 }
  0xfc   : > { %v421_v41 = vpop.f32.mrf.mxu0 }
 0x101   : > { %458 = vadd.xlane.f32.xlu2 %v434_v43 }
 0x104   : > { %v423_v45 = vpop.f32.mrf.mxu0  ;;  %v443_v46 = vpop.xlane.xlu0 %442 }
 0x105   : > { %v2306_v47 = vadd.f32 %v2260_v9, %v423_v45  ;;  %v474_v48 = vmul.f32 0.03125, %v443_v46  ;;  %v2040_v45 = vld [vmem:[%s3338_s3 + $0x8] sm:$0xff] }
 0x107   : > { %v441_v49 = vmax.f32 %v2306_v47, 0.0  ;;  %v490_v50 = vsub.f32 %v426_v12, %v474_v48 }
 0x109   : > { %472 = vadd.xlane.f32.xlu2 %v441_v49  ;;  %v2314_v51 = vsel %vm285_vm1, %v490_v50, 0.0  ;;  %v2039_v50 = vld [vmem:[%s3338_s3] sm:$0xff] }
 0x10a   : > { %v524_v52 = vmul.f32 %v2314_v51, %v2314_v51 }
 0x10c   : > { %540 = vadd.xlane.f32.xlu0 %v524_v52  ;;  %v445_v54 = vpop.xlane.xlu0 %444 }
 0x10d   : > { %v475_v55 = vmul.f32 0.03125, %v445_v54 }
 0x10f   : > { %v491_v58 = vsub.f32 %v427_v15, %v475_v55  ;;  %v2363_v15 = vadd.f32 %v2260_v9, %v421_v41  ;;  %v2043_v41 = vld [vmem:[%s3338_s3 + $0x20] sm:$0xff] }
 0x110   : > { %893 = vmatpush.bf16.msra.mxu1 %v2043_v41  ;;  %2058 = vmatpush.bf16.msra.mxu3 %v2043_v41 }
 0x111   : > { %462 = vadd.xlane.f32.xlu2 %v436_v57  ;;  %v2329_v59 = vsel %vm285_vm1, %v491_v58, 0.0 }
 0x112   : > { %v525_v61 = vmul.f32 %v2329_v59, %v2329_v59 }
 0x114   : > { %v447_v62 = vpop.xlane.xlu1 %446  ;;  %456 = vadd.xlane.f32.xlu0 %v433_v60  ;;  %542 = vadd.xlane.f32.xlu1 %v525_v61 }
 0x115   : > { %v476_v63 = vmul.f32 0.03125, %v447_v62  ;;  %894 = vmatpush.bf16.msra.mxu1 %v2042_v38  ;;  %2059 = vmatpush.bf16.msra.mxu3 %v2042_v38 }
 0x117   : > { %v492_v1 = vsub.f32 %v428_v18, %v476_v63  ;;  %v440_v18 = vmax.f32 %v2363_v15, 0.0 }
 0x119   : > { %v2341_v2 = vsel %vm285_vm1, %v492_v1, 0.0 }
 0x11a   : > { %v526_v4 = vmul.f32 %v2341_v2, %v2341_v2 }
 0x11c   : > { %v449_v5 = vpop.xlane.xlu1 %448  ;;  %544 = vadd.xlane.f32.xlu0 %v526_v4  ;;  %466 = vadd.xlane.f32.xlu1 %v438_v3 }
 0x11d   : > { %v477_v6 = vmul.f32 0.03125, %v449_v5 }
 0x11f   : > { %v493_v8 = vsub.f32 %v429_v21, %v477_v6 }
 0x121   : > { %v2355_v10 = vsel %vm285_vm1, %v493_v8, 0.0 }
 0x122   : > { %v527_v12 = vmul.f32 %v2355_v10, %v2355_v10 }
 0x124   : > { %v451_v13 = vpop.xlane.xlu2 %450  ;;  %460 = vadd.xlane.f32.xlu0 %v435_v11  ;;  %546 = vadd.xlane.f32.xlu1 %v527_v12 }
 0x125   : > { %v478_v14 = vmul.f32 0.03125, %v451_v13 }
 0x127   : > { %v494_v16 = vsub.f32 %v430_v24, %v478_v14 }
 0x129   : > { %v2369_v17 = vsel %vm285_vm1, %v494_v16, 0.0 }
 0x12a   : > { %v528_v19 = vmul.f32 %v2369_v17, %v2369_v17 }
 0x12c   : > { %v453_v20 = vpop.xlane.xlu2 %452  ;;  %548 = vadd.xlane.f32.xlu0 %v528_v19  ;;  %470 = vadd.xlane.f32.xlu1 %v440_v18 }
 0x12d   : > { %v479_v21 = vmul.f32 0.03125, %v453_v20 }
 0x12f   : > { %v495_v23 = vsub.f32 %v431_v27, %v479_v21 }
 0x131   : > { %v2384_v24 = vsel %vm285_vm1, %v495_v23, 0.0 }
 0x132   : > { %v529_v28 = vmul.f32 %v2384_v24, %v2384_v24 }
 0x134   : > { %v455_v31 = vpop.xlane.xlu2 %454  ;;  %464 = vadd.xlane.f32.xlu0 %v437_v25  ;;  %550 = vadd.xlane.f32.xlu1 %v529_v28 }
 0x135   : > { %v480_v32 = vmul.f32 0.03125, %v455_v31 }
 0x137   : > { %v496_v9 = vsub.f32 %v432_v30, %v480_v32 }
 0x139   : > { %v2395_v26 = vsel %vm285_vm1, %v496_v9, 0.0 }
 0x13a   : > { %v530_v27 = vmul.f32 %v2395_v26, %v2395_v26 }
 0x13c   : > { %552 = vadd.xlane.f32.xlu1 %v530_v27 }
 0x16c   : > { %v469_v29 = vpop.xlane.xlu2 %468 }
 0x16d   : > { %v487_v30 = vmul.f32 0.03125, %v469_v29 }
 0x16f   : > { %v503_v36 = vsub.f32 %v439_v39, %v487_v30  ;;  %v2041_v39 = vld [vmem:[%s3338_s3 + $0x10] sm:$0xff] }
 0x170   : > { %895 = vmatpush.bf16.msra.mxu1 %v2041_v39  ;;  %2060 = vmatpush.bf16.msra.mxu3 %v2041_v39 }
 0x171   : > { %v2412_v37 = vsel %vm285_vm1, %v503_v36, 0.0 }
 0x172   : > { %v537_v42 = vmul.f32 %v2412_v37, %v2412_v37 }
 0x174   : > { %566 = vadd.xlane.f32.xlu1 %v537_v42  ;;  %896 = vmatpush.bf16.msra.mxu1 %v2040_v45  ;;  %v459_v52 = vpop.xlane.xlu2 %458 }
 0x175   : > { %2061 = vmatpush.bf16.msra.mxu3 %v2040_v45  ;;  %v482_v63 = vmul.f32 0.03125, %v459_v52 }
 0x177   : > { %v498_v13 = vsub.f32 %v434_v43, %v482_v63 }
 0x178   : > { %897 = vmatpush.bf16.msra.mxu1 %v2039_v50 }
 0x179   : > { %2062 = vmatpush.bf16.msra.mxu3 %v2039_v50  ;;  %v2443_v31 = vsel %vm285_vm1, %v498_v13, 0.0 }
 0x17a   : > { %v532_v34 = vmul.f32 %v2443_v31, %v2443_v31 }
 0x17c   : > { %v473_v8 = vpop.xlane.xlu2 %472 }
 0x17d   : > { %v489_v23 = vmul.f32 0.03125, %v473_v8 }
 0x17f   : > { %v541_v46 = vpop.xlane.xlu0 %540  ;;  %v505_v29 = vsub.f32 %v441_v49, %v489_v23 }
 0x180   : > { %v572_v48 = vmul.f32 0.03125, %v541_v46 }
 0x181   : > { %v2468_v46 = vsel %vm285_vm1, %v505_v29, 0.0 }
 0x182   : > { %v588_v54 = vadd.f32 1e-05, %v572_v48 }
 0x184   : > { %2088 = vrsqrt.f32 %v588_v54  ;;  %vm610_vm3 = vweird.f32 %v588_v54  ;;  %v463_v35 = vpop.xlane.xlu2 %462 }
 0x185   : > { %v484_v39 = vmul.f32 0.03125, %v463_v35 }
 0x187   : > { %v543_v55 = vpop.xlane.xlu1 %542  ;;  %v457_v58 = vpop.xlane.xlu0 %456 }
 0x188   : > { %v573_v61 = vmul.f32 0.03125, %v543_v55  ;;  %v481_v62 = vmul.f32 0.03125, %v457_v58  ;;  %v2476_v55 = vld [vmem:[%s3337_s2 + $0x1] ss:$0 sm:$0xff] }
 0x18a   : > { %v2089_v1 = vpop.eup %2088  ;;  %v589_v4 = vadd.f32 1e-05, %v573_v61  ;;  %v497_v5 = vsub.f32 %v433_v60, %v481_v62  ;;  %v539_v62 = vmul.f32 %v2468_v46, %v2468_v46 }
 0x18b   : > { %v605_v6 = vmul.f32 %v2089_v1, %v588_v54  ;;  %vm611_vm2 = vweird.f32 %v2089_v1 }
 0x18c   : > { %2090 = vrsqrt.f32 %v589_v4  ;;  %v2435_v12 = vsel %vm285_vm1, %v497_v5, 0.0  ;;  %vm2460_vm4 = vmor %vm610_vm3, %vm611_vm2  ;;  %vm620_vm6 = vweird.f32 %v589_v4 }
 0x18d   : > { %v606_v14 = vmul.f32 %v2089_v1, %v605_v6  ;;  %v531_v16 = vmul.f32 %v2435_v12, %v2435_v12  ;;  %v2494_v6 = vld [vmem:[%s3337_s2 + $0x2] ss:$0 sm:$0xff] }
 0x18f   : > { %v607_v19 = vmul.f32 0.5, %v606_v14  ;;  %v467_v20 = vpop.xlane.xlu1 %466  ;;  %554 = vadd.xlane.f32.xlu2 %v531_v16  ;;  %v545_v21 = vpop.xlane.xlu0 %544 }
 0x190   : > { %v486_v56 = vmul.f32 0.03125, %v467_v20  ;;  %v574_v60 = vmul.f32 0.03125, %v545_v21 }
 0x191   : > { %v608_v28 = vsub.f32 1.5, %v607_v19 }
 0x192   : > { %v2091_v32 = vpop.eup %2090  ;;  %v502_v40 = vsub.f32 %v438_v3, %v486_v56  ;;  %v2447_v43 = vadd.f32 1e-05, %v574_v60 }
 0x193   : > { %v609_v9 = vmul.f32 %v2089_v1, %v608_v28  ;;  %v615_v27 = vmul.f32 %v2091_v32, %v589_v4  ;;  %vm621_vm5 = vweird.f32 %v2091_v32 }
 0x194   : > { %2092 = vrsqrt.f32 %v2447_v43  ;;  %v2452_v33 = vsel %vm285_vm1, %v502_v40, 0.0  ;;  %vm622_vm7 = vmor %vm620_vm6, %vm621_vm5  ;;  %vm630_vm9 = vweird.f32 %v2447_v43 }
 0x195   : > { %v616_v0 = vmul.f32 %v2091_v32, %v615_v27  ;;  %v536_v3 = vmul.f32 %v2452_v33, %v2452_v33  ;;  %v613_v38 = vsel %vm2460_vm4, %v2089_v1, %v609_v9 }
 0x196   : > { %v764_v54 = vmul.f32 %v613_v38, %v2314_v51  ;;  %v500_v51 = vsub.f32 %v436_v57, %v484_v39 }
 0x197   : > { %v617_v36 = vmul.f32 0.5, %v616_v0  ;;  %564 = vadd.xlane.f32.xlu0 %v536_v3  ;;  %v547_v41 = vpop.xlane.xlu1 %546  ;;  %556 = vadd.xlane.f32.xlu2 %v532_v34  ;;  %v461_v42 = vpop.xlane.xlu0 %460 }
 0x198   : > { %v575_v47 = vmul.f32 0.03125, %v547_v41  ;;  %v483_v49 = vmul.f32 0.03125, %v461_v42  ;;  %v782_v5 = vmul.f32 %v2476_v55, %v764_v54 }
 0x199   : > { %v618_v45 = vsub.f32 1.5, %v617_v36 }
 0x19a   : > { %v2093_v48 = vpop.eup %2092  ;;  %v591_v50 = vadd.f32 1e-05, %v575_v47  ;;  %v499_v52 = vsub.f32 %v435_v11, %v483_v49  ;;  %v800_v60 = vadd.f32 %v2494_v6, %v782_v5 }
 0x19b   : > { %v619_v58 = vmul.f32 %v2091_v32, %v618_v45  ;;  %v625_v61 = vmul.f32 %v2093_v48, %v2447_v43  ;;  %vm631_vm8 = vweird.f32 %v2093_v48 }
 0x19c   : > { %2094 = vrsqrt.f32 %v591_v50  ;;  %v2483_v7 = vsel %vm285_vm1, %v499_v52, 0.0  ;;  %vm632_vm10 = vmor %vm630_vm9, %vm631_vm8  ;;  %vm640_vm12 = vweird.f32 %v591_v50 }
 0x19d   : > { %v626_v11 = vmul.f32 %v2093_v48, %v625_v61  ;;  %v533_v63 = vmul.f32 %v2483_v7, %v2483_v7  ;;  %v623_v1 = vsel %vm622_vm7, %v2091_v32, %v619_v58 }
 0x19e   : > { %v765_v4 = vmul.f32 %v623_v1, %v2329_v59  ;;  %v2499_v59 = vsel %vm285_vm1, %v500_v51, 0.0 }
 0x19f   : > { %v627_v8 = vmul.f32 0.5, %v626_v11  ;;  %v471_v13 = vpop.xlane.xlu1 %470  ;;  %570 = vadd.xlane.f32.xlu2 %v539_v62  ;;  %558 = vadd.xlane.f32.xlu0 %v533_v63  ;;  %v549_v53 = vpop.xlane.xlu0 %548 }
 0x1a0   : > { %v488_v57 = vmul.f32 0.03125, %v471_v13  ;;  %v576_v14 = vmul.f32 0.03125, %v549_v53  ;;  %v783_v16 = vmul.f32 %v2476_v55, %v765_v4 }
 0x1a1   : > { %v628_v19 = vsub.f32 1.5, %v627_v8 }
 0x1a2   : > { %v2095_v20 = vpop.eup %2094  ;;  %v504_v21 = vsub.f32 %v440_v18, %v488_v57  ;;  %v592_v56 = vadd.f32 1e-05, %v576_v14  ;;  %v801_v23 = vadd.f32 %v2494_v6, %v783_v16  ;;  %v534_v18 = vmul.f32 %v2499_v59, %v2499_v59 }
 0x1a3   : > { %v629_v28 = vmul.f32 %v2093_v48, %v628_v19  ;;  %v635_v32 = vmul.f32 %v2095_v20, %v591_v50  ;;  %vm641_vm11 = vweird.f32 %v2095_v20 }
 0x1a4   : > { %2096 = vrsqrt.f32 %v592_v56  ;;  %v816_v40 = vpack.c.bf16 %v801_v23, %v800_v60  ;;  %v2507_v9 = vsel %vm285_vm1, %v504_v21, 0.0  ;;  %vm642_vm13 = vmor %vm640_vm12, %vm641_vm11  ;;  %vm650_vm15 = vweird.f32 %v592_v56 }
 0x1a5   : > { %v636_v27 = vmul.f32 %v2095_v20, %v635_v32  ;;  %v538_v15 = vmul.f32 %v2507_v9, %v2507_v9  ;;  %v633_v3 = vsel %vm632_vm10, %v2093_v48, %v629_v28 }
 0x1a6   : > { %898 = vmatmul.bf16.vlgmr.msra.gmra.mxu1 %v816_v40  ;;  %v766_v38 = vmul.f32 %v633_v3, %v2341_v2 }
 0x1a7   : > { %v637_v34 = vmul.f32 0.5, %v636_v27  ;;  %568 = vadd.xlane.f32.xlu1 %v538_v15  ;;  %v551_v29 = vpop.xlane.xlu1 %550  ;;  %560 = vadd.xlane.f32.xlu0 %v534_v18  ;;  %v465_v0 = vpop.xlane.xlu0 %464 }
 0x1a8   : > { %v577_v30 = vmul.f32 0.03125, %v551_v29  ;;  %v485_v35 = vmul.f32 0.03125, %v465_v0  ;;  %v784_v22 = vmul.f32 %v2476_v55, %v766_v38 }
 0x1a9   : > { %v638_v36 = vsub.f32 1.5, %v637_v34 }
 0x1aa   : > { %v2097_v43 = vpop.eup %2096  ;;  %v593_v41 = vadd.f32 1e-05, %v577_v30  ;;  %v501_v42 = vsub.f32 %v437_v25, %v485_v35  ;;  %v802_v61 = vadd.f32 %v2494_v6, %v784_v22 }
 0x1ab   : > { %v639_v47 = vmul.f32 %v2095_v20, %v638_v36  ;;  %v645_v49 = vmul.f32 %v2097_v43, %v592_v56  ;;  %vm651_vm14 = vweird.f32 %v2097_v43 }
 0x1ac   : > { %2098 = vrsqrt.f32 %v593_v41  ;;  %v2519_v39 = vsel %vm285_vm1, %v501_v42, 0.0  ;;  %vm652_vm0 = vmor %vm650_vm15, %vm651_vm14  ;;  %vm660_vm3 = vweird.f32 %v593_v41 }
 0x1ad   : > { %v646_v45 = vmul.f32 %v2097_v43, %v645_v49  ;;  %v535_v48 = vmul.f32 %v2519_v39, %v2519_v39  ;;  %v643_v52 = vsel %vm642_vm13, %v2095_v20, %v639_v47 }
 0x1ae   : > { %v767_v54 = vmul.f32 %v643_v52, %v2355_v10 }
 0x1af   : > { %v647_v25 = vmul.f32 0.5, %v646_v45  ;;  %562 = vadd.xlane.f32.xlu1 %v535_v48  ;;  %v553_v56 = vpop.xlane.xlu1 %552 }
 0x1b0   : > { %v785_v2 = vmul.f32 %v2476_v55, %v767_v54  ;;  %v578_v60 = vmul.f32 0.03125, %v553_v56 }
 0x1b1   : > { %v648_v50 = vsub.f32 1.5, %v647_v25 }
 0x1b2   : > { %v2099_v58 = vpop.eup %2098  ;;  %v803_v62 = vadd.f32 %v2494_v6, %v785_v2  ;;  %v594_v23 = vadd.f32 1e-05, %v578_v60 }
 0x1b3   : > { %v649_v51 = vmul.f32 %v2097_v43, %v648_v50  ;;  %v655_v11 = vmul.f32 %v2099_v58, %v593_v41  ;;  %vm661_vm2 = vweird.f32 %v2099_v58 }
 0x1b4   : > { %v817_v63 = vpack.c.bf16 %v803_v62, %v802_v61  ;;  %vm662_vm4 = vmor %vm660_vm3, %vm661_vm2  ;;  %2100 = vrsqrt.f32 %v594_v23  ;;  %vm670_vm6 = vweird.f32 %v594_v23 }
 0x1b5   : > { %v656_v1 = vmul.f32 %v2099_v58, %v655_v11  ;;  %v653_v4 = vsel %vm652_vm0, %v2097_v43, %v649_v51 }
 0x1b6   : > { %903 = vmatmul.bf16.gmra.mxu1 %v817_v63  ;;  %v768_v8 = vmul.f32 %v653_v4, %v2369_v17 }
 0x1b7   : > { %v657_v10 = vmul.f32 0.5, %v656_v1 }
 0x1b8   : > { %v786_v14 = vmul.f32 %v2476_v55, %v768_v8 }
 0x1b9   : > { %v658_v5 = vsub.f32 1.5, %v657_v10 }
 0x1ba   : > { %v804_v19 = vadd.f32 %v2494_v6, %v786_v14  ;;  %v2101_v40 = vpop.eup %2100 }
 0x1bb   : > { %v659_v13 = vmul.f32 %v2099_v58, %v658_v5  ;;  %v665_v27 = vmul.f32 %v2101_v40, %v594_v23  ;;  %vm671_vm5 = vweird.f32 %v2101_v40 }
 0x1bc   : > { %vm2544_vm7 = vmor %vm670_vm6, %vm671_vm5 }
 0x1bd   : > { %v663_v53 = vsel %vm662_vm4, %v2099_v58, %v659_v13  ;;  %v666_v15 = vmul.f32 %v2101_v40, %v665_v27 }
 0x1be   : > { %v769_v57 = vmul.f32 %v663_v53, %v2384_v24 }
 0x1bf   : > { %v667_v0 = vmul.f32 0.5, %v666_v15 }
 0x1c0   : > { %v787_v16 = vmul.f32 %v2476_v55, %v769_v57 }
 0x1c1   : > { %v668_v36 = vsub.f32 1.5, %v667_v0 }
 0x1c2   : > { %v805_v20 = vadd.f32 %v2494_v6, %v787_v16 }
 0x1c3   : > { %v669_v48 = vmul.f32 %v2101_v40, %v668_v36 }
 0x1c4   : > { %v818_v21 = vpack.c.bf16 %v805_v20, %v804_v19 }
 0x1c5   : > { %v673_v62 = vsel %vm2544_vm7, %v2101_v40, %v669_v48 }
 0x1c6   : > { %908 = vmatmul.bf16.gmra.mxu1 %v818_v21  ;;  %v770_v13 = vmul.f32 %v673_v62, %v2395_v26 }
 0x1c8   : > { %v788_v60 = vmul.f32 %v2476_v55, %v770_v13 }
 0x1e7   : > { %v567_v17 = vpop.xlane.xlu1 %566 }
 0x1e8   : > { %v585_v28 = vmul.f32 0.03125, %v567_v17 }
 0x1ea   : > { %v601_v32 = vadd.f32 1e-05, %v585_v28 }
 0x1ec   : > { %2102 = vrsqrt.f32 %v601_v32  ;;  %vm740_vm12 = vweird.f32 %v601_v32 }
 0x1f2   : > { %v2534_v34 = vpop.eup %2102 }
 0x1f3   : > { %v735_v3 = vmul.f32 %v2534_v34, %v601_v32  ;;  %vm741_vm10 = vweird.f32 %v2534_v34 }
 0x1f4   : > { %vm2569_vm13 = vmor %vm740_vm12, %vm741_vm10 }
 0x1f5   : > { %v736_v42 = vmul.f32 %v2534_v34, %v735_v3 }
 0x1f7   : > { %v737_v52 = vmul.f32 0.5, %v736_v42  ;;  %v2598_v42 = vld [vmem:[%s3339_s4] ss:$0 sm:$0xff] }
 0x1f9   : > { %v738_v51 = vsub.f32 1.5, %v737_v52 }
 0x1fb   : > { %v739_v57 = vmul.f32 %v2534_v34, %v738_v51 }
 0x202   : > { %v555_v24 = vpop.xlane.xlu2 %554 }
 0x203   : > { %v579_v18 = vmul.f32 0.03125, %v555_v24 }
 0x205   : > { %v595_v29 = vadd.f32 1e-05, %v579_v18 }
 0x207   : > { %2104 = vrsqrt.f32 %v595_v29  ;;  %vm680_vm9 = vweird.f32 %v595_v29 }
 0x20a   : > { %v557_v30 = vpop.xlane.xlu2 %556  ;;  %v565_v35 = vpop.xlane.xlu0 %564 }
 0x20b   : > { %v580_v43 = vmul.f32 0.03125, %v557_v30  ;;  %v584_v41 = vmul.f32 0.03125, %v565_v35  ;;  %v806_v35 = vadd.f32 %v2494_v6, %v788_v60 }
 0x20d   : > { %v2105_v38 = vpop.eup %2104  ;;  %v2538_v47 = vadd.f32 1e-05, %v580_v43  ;;  %v2540_v49 = vadd.f32 1e-05, %v584_v41 }
 0x20e   : > { %v675_v45 = vmul.f32 %v2105_v38, %v595_v29  ;;  %vm681_vm8 = vweird.f32 %v2105_v38 }
 0x20f   : > { %2106 = vrsqrt.f32 %v2538_v47  ;;  %vm682_vm11 = vmor %vm680_vm9, %vm681_vm8  ;;  %vm730_vm0 = vweird.f32 %v2540_v49  ;;  %vm690_vm3 = vweird.f32 %v2538_v47 }
 0x210   : > { %v676_v54 = vmul.f32 %v2105_v38, %v675_v45  ;;  %2108 = vrsqrt.f32 %v2540_v49 }
 0x212   : > { %v677_v25 = vmul.f32 0.5, %v676_v54  ;;  %v571_v2 = vpop.xlane.xlu2 %570  ;;  %v559_v50 = vpop.xlane.xlu0 %558 }
 0x213   : > { %v587_v58 = vmul.f32 0.03125, %v571_v2  ;;  %v581_v61 = vmul.f32 0.03125, %v559_v50 }
 0x214   : > { %v678_v11 = vsub.f32 1.5, %v677_v25 }
 0x215   : > { %v2550_v63 = vpop.eup %2106  ;;  %v2552_v1 = vadd.f32 1e-05, %v587_v58  ;;  %v2554_v10 = vadd.f32 1e-05, %v581_v61 }
 0x216   : > { %v2109_v4 = vpop.eup %2108  ;;  %v679_v5 = vmul.f32 %v2105_v38, %v678_v11  ;;  %v685_v8 = vmul.f32 %v2550_v63, %v2538_v47  ;;  %vm691_vm15 = vweird.f32 %v2550_v63 }
 0x217   : > { %v725_v53 = vmul.f32 %v2109_v4, %v2540_v49  ;;  %2110 = vrsqrt.f32 %v2552_v1  ;;  %vm731_vm14 = vweird.f32 %v2109_v4  ;;  %vm2604_vm4 = vmor %vm690_vm3, %vm691_vm15  ;;  %vm700_vm5 = vweird.f32 %v2554_v10 }
 0x218   : > { %v686_v14 = vmul.f32 %v2550_v63, %v685_v8  ;;  %2112 = vrsqrt.f32 %v2554_v10  ;;  %v683_v16 = vsel %vm682_vm11, %v2105_v38, %v679_v5  ;;  %vm732_vm2 = vmor %vm730_vm0, %vm731_vm14  ;;  %vm760_vm9 = vweird.f32 %v2552_v1 }
 0x219   : > { %v726_v19 = vmul.f32 %v2109_v4, %v725_v53  ;;  %v771_v20 = vmul.f32 %v683_v16, %v2435_v12  ;;  %v743_v12 = vsel %vm2569_vm13, %v2534_v34, %v739_v57 }
 0x21a   : > { %v687_v21 = vmul.f32 0.5, %v686_v14  ;;  %v569_v26 = vpop.xlane.xlu1 %568  ;;  %v561_v56 = vpop.xlane.xlu0 %560  ;;  %v777_v38 = vmul.f32 %v743_v12, %v2412_v37 }
 0x21b   : > { %v727_v17 = vmul.f32 0.5, %v726_v19  ;;  %v586_v28 = vmul.f32 0.03125, %v569_v26  ;;  %v582_v40 = vmul.f32 0.03125, %v561_v56  ;;  %v789_v27 = vmul.f32 %v2476_v55, %v771_v20 }
 0x21c   : > { %v688_v24 = vsub.f32 1.5, %v687_v21  ;;  %v795_v51 = vmul.f32 %v2476_v55, %v777_v38 }
 0x21d   : > { %v2577_v32 = vpop.eup %2110  ;;  %v728_v15 = vsub.f32 1.5, %v727_v17  ;;  %v2579_v18 = vadd.f32 1e-05, %v586_v28  ;;  %v2581_v29 = vadd.f32 1e-05, %v582_v40  ;;  %v807_v0 = vadd.f32 %v2494_v6, %v789_v27 }
 0x21e   : > { %v2113_v3 = vpop.eup %2112  ;;  %v755_v30 = vmul.f32 %v2577_v32, %v2552_v1  ;;  %v689_v34 = vmul.f32 %v2550_v63, %v688_v24  ;;  %vm761_vm7 = vweird.f32 %v2577_v32  ;;  %v813_v19 = vadd.f32 %v2494_v6, %v795_v51 }
 0x21f   : > { %v729_v36 = vmul.f32 %v2109_v4, %v728_v15  ;;  %v695_v43 = vmul.f32 %v2113_v3, %v2554_v10  ;;  %2114 = vrsqrt.f32 %v2579_v18  ;;  %v819_v45 = vpack.c.bf16 %v807_v0, %v806_v35  ;;  %vm2634_vm10 = vmor %vm760_vm9, %vm761_vm7 }
 0x220   : > { %v756_v41 = vmul.f32 %v2577_v32, %v755_v30  ;;  %2116 = vrsqrt.f32 %v2581_v29  ;;  %v693_v37 = vsel %vm2604_vm4, %v2550_v63, %v689_v34  ;;  %vm701_vm6 = vweird.f32 %v2113_v3 }
 0x221   : > { %v696_v49 = vmul.f32 %v2113_v3, %v695_v43  ;;  %v733_v48 = vsel %vm732_vm2, %v2109_v4, %v729_v36  ;;  %913 = vmatmul.bf16.gmra.mxu1 %v819_v45  ;;  %v772_v13 = vmul.f32 %v693_v37, %v2443_v31  ;;  %vm702_vm8 = vmor %vm700_vm5, %vm701_vm6  ;;  %vm750_vm12 = vweird.f32 %v2579_v18 }
 0x222   : > { %v757_v54 = vmul.f32 0.5, %v756_v41  ;;  %v563_v22 = vpop.xlane.xlu1 %562  ;;  %v776_v25 = vmul.f32 %v733_v48, %v2452_v33  ;;  %vm710_vm15 = vweird.f32 %v2581_v29 }
 0x223   : > { %v697_v2 = vmul.f32 0.5, %v696_v49  ;;  %v583_v50 = vmul.f32 0.03125, %v563_v22  ;;  %v899_v58 = vpop.f32.mrf.mxu1  ;;  %v790_v28 = vmul.f32 %v2476_v55, %v772_v13 }
 0x224   : > { %v758_v47 = vsub.f32 1.5, %v757_v54  ;;  %v2613_v61 = vadd.f32 %v2598_v42, %v899_v58  ;;  %v794_v62 = vmul.f32 %v2476_v55, %v776_v25 }
 0x225   : > { %v2115_v11 = vpop.eup %2114  ;;  %v698_v4 = vsub.f32 1.5, %v697_v2  ;;  %v2618_v33 = vadd.f32 1e-05, %v583_v50  ;;  %v808_v35 = vadd.f32 %v2494_v6, %v790_v28 }
 0x226   : > { %v2117_v5 = vpop.eup %2116  ;;  %v745_v63 = vmul.f32 %v2115_v11, %v2579_v18  ;;  %v939_v8 = vmax.f32 %v2613_v61, 0.0  ;;  %v759_v53 = vmul.f32 %v2577_v32, %v758_v47  ;;  %v812_v16 = vadd.f32 %v2494_v6, %v794_v62 }
 0x227   : > { %v699_v57 = vmul.f32 %v2113_v3, %v698_v4  ;;  %v705_v14 = vmul.f32 %v2117_v5, %v2581_v29  ;;  %2118 = vrsqrt.f32 %v2618_v33  ;;  %vm751_vm11 = vweird.f32 %v2115_v11 }
 0x228   : > { %v746_v10 = vmul.f32 %v2115_v11, %v745_v63  ;;  %955 = vadd.xlane.f32.xlu2 %v939_v8  ;;  %v822_v56 = vpack.c.bf16 %v813_v19, %v812_v16  ;;  %v763_v1 = vsel %vm2634_vm10, %v2577_v32, %v759_v53  ;;  %vm711_vm13 = vweird.f32 %v2117_v5  ;;  %vm752_vm14 = vmor %vm750_vm12, %vm751_vm11 }
 0x229   : > { %v706_v20 = vmul.f32 %v2117_v5, %v705_v14  ;;  %v703_v31 = vsel %vm702_vm8, %v2113_v3, %v699_v57  ;;  %v779_v32 = vmul.f32 %v763_v1, %v2468_v46  ;;  %vm712_vm0 = vmor %vm710_vm15, %vm711_vm13  ;;  %vm720_vm3 = vweird.f32 %v2618_v33 }
 0x22a   : > { %v747_v26 = vmul.f32 0.5, %v746_v10  ;;  %v773_v60 = vmul.f32 %v703_v31, %v2483_v7  ;;  %928 = vmatmul.bf16.vlgmr.msra.gmra.mxu3 %v822_v56 }
 0x22b   : > { %v707_v23 = vmul.f32 0.5, %v706_v20  ;;  %v901_v17 = vpop.f32.mrf.mxu1  ;;  %v797_v46 = vmul.f32 %v2476_v55, %v779_v32 }
 0x22c   : > { %v748_v40 = vsub.f32 1.5, %v747_v26  ;;  %v2644_v27 = vadd.f32 %v2598_v42, %v901_v17  ;;  %v791_v24 = vmul.f32 %v2476_v55, %v773_v60 }
 0x22d   : > { %v2119_v12 = vpop.eup %2118  ;;  %v708_v7 = vsub.f32 1.5, %v707_v23  ;;  %v815_v2 = vadd.f32 %v2494_v6, %v797_v46 }
 0x22e   : > { %v749_v15 = vmul.f32 %v2115_v11, %v748_v40  ;;  %v715_v0 = vmul.f32 %v2119_v12, %v2618_v33  ;;  %v940_v3 = vmax.f32 %v2644_v27, 0.0  ;;  %v809_v34 = vadd.f32 %v2494_v6, %v791_v24 }
 0x22f   : > { %v709_v30 = vmul.f32 %v2117_v5, %v708_v7  ;;  %vm721_vm2 = vweird.f32 %v2119_v12 }
 0x230   : > { %v716_v36 = vmul.f32 %v2119_v12, %v715_v0  ;;  %957 = vadd.xlane.f32.xlu0 %v940_v3  ;;  %v753_v18 = vsel %vm752_vm14, %v2115_v11, %v749_v15  ;;  %v820_v43 = vpack.c.bf16 %v809_v34, %v808_v35  ;;  %vm722_vm4 = vmor %vm720_vm3, %vm721_vm2 }
 0x231   : > { %v778_v41 = vmul.f32 %v753_v18, %v2507_v9  ;;  %v713_v49 = vsel %vm712_vm0, %v2117_v5, %v709_v30 }
 0x232   : > { %v717_v38 = vmul.f32 0.5, %v716_v36  ;;  %918 = vmatmul.bf16.gmra.mxu1 %v820_v43  ;;  %v774_v22 = vmul.f32 %v713_v49, %v2499_v59 }
 0x233   : > { %v904_v45 = vpop.f32.mrf.mxu1  ;;  %v796_v48 = vmul.f32 %v2476_v55, %v778_v41 }
 0x234   : > { %v718_v52 = vsub.f32 1.5, %v717_v38  ;;  %v905_v29 = vadd.f32 %v2598_v42, %v904_v45  ;;  %v792_v47 = vmul.f32 %v2476_v55, %v774_v22 }
 0x235   : > { %v814_v54 = vadd.f32 %v2494_v6, %v796_v48 }
 0x236   : > { %v719_v25 = vmul.f32 %v2119_v12, %v718_v52  ;;  %v941_v9 = vmax.f32 %v905_v29, 0.0  ;;  %v810_v11 = vadd.f32 %v2494_v6, %v792_v47 }
 0x237   : > { %v823_v50 = vpack.c.bf16 %v815_v2, %v814_v54 }
 0x238   : > { %959 = vadd.xlane.f32.xlu1 %v941_v9  ;;  %v723_v58 = vsel %vm722_vm4, %v2119_v12, %v719_v25 }
 0x239   : > { %v775_v37 = vmul.f32 %v723_v58, %v2519_v39 }
 0x23a   : > { %933 = vmatmul.bf16.gmra.mxu3 %v823_v50 }
 0x23b   : > { %v906_v62 = vpop.f32.mrf.mxu1  ;;  %v793_v51 = vmul.f32 %v2476_v55, %v775_v37 }
 0x23c   : > { %v907_v59 = vadd.f32 %v2598_v42, %v906_v62 }
 0x23d   : > { %v811_v4 = vadd.f32 %v2494_v6, %v793_v51 }
 0x23e   : > { %v942_v33 = vmax.f32 %v907_v59, 0.0 }
 0x23f   : > { %v821_v5 = vpack.c.bf16 %v811_v4, %v810_v11 }
 0x240   : > { %961 = vadd.xlane.f32.xlu2 %v942_v33 }
 0x242   : > { %923 = vmatmul.bf16.gmra.mxu1 %v821_v5 }
 0x243   : > { %v909_v63 = vpop.f32.mrf.mxu1 }
 0x244   : > { %v910_v13 = vadd.f32 %v2598_v42, %v909_v63 }
 0x246   : > { %v943_v39 = vmax.f32 %v910_v13, 0.0 }
 0x248   : > { %963 = vadd.xlane.f32.xlu0 %v943_v39 }
 0x24b   : > { %v911_v53 = vpop.f32.mrf.mxu1 }
 0x24c   : > { %v2672_v57 = vadd.f32 %v2598_v42, %v911_v53 }
 0x24e   : > { %v944_v55 = vmax.f32 %v2672_v57, 0.0  ;;  %v2054_v57 = vld [vmem:[%s3340_s5 + $0x38] sm:$0xff] }
 0x24f   : > { %1401 = vmatpush.bf16.msra.mxu2 %v2054_v57  ;;  %2063 = vmatpush.bf16.msrb.mxu3 %v2054_v57 }
 0x250   : > { %965 = vadd.xlane.f32.xlu1 %v944_v55 }
 0x29b   : > { %v956_v14 = vpop.xlane.xlu2 %955 }
 0x29c   : > { %v987_v6 = vmul.f32 0.03125, %v956_v14  ;;  %v2051_v14 = vld [vmem:[%s3340_s5 + $0x20] sm:$0xff] }
 0x29e   : > { %v1003_v10 = vsub.f32 %v939_v8, %v987_v6  ;;  %v914_v16 = vpop.f32.mrf.mxu1  ;;  %v2050_v6 = vld [vmem:[%s3340_s5 + $0x18] sm:$0xff] }
 0x29f   : > { %v2684_v20 = vadd.f32 %v2598_v42, %v914_v16 }
 0x2a0   : > { %v2681_v19 = vsel %vm285_vm1, %v1003_v10, 0.0  ;;  %v2049_v10 = vld [vmem:[%s3340_s5 + $0x10] sm:$0xff] }
 0x2a1   : > { %v1035_v31 = vmul.f32 %v2681_v19, %v2681_v19  ;;  %v945_v21 = vmax.f32 %v2684_v20, 0.0 }
 0x2a3   : > { %1051 = vadd.xlane.f32.xlu2 %v1035_v31  ;;  %v958_v26 = vpop.xlane.xlu0 %957  ;;  %967 = vadd.xlane.f32.xlu1 %v945_v21 }
 0x2a4   : > { %v988_v56 = vmul.f32 0.03125, %v958_v26  ;;  %v2048_v26 = vld [vmem:[%s3340_s5 + $0x8] sm:$0xff] }
 0x2a6   : > { %v1004_v61 = vsub.f32 %v940_v3, %v988_v56  ;;  %v916_v8 = vpop.f32.mrf.mxu1 }
 0x2a7   : > { %v2698_v23 = vadd.f32 %v2598_v42, %v916_v8 }
 0x2a8   : > { %v2695_v60 = vsel %vm285_vm1, %v1004_v61, 0.0 }
 0x2a9   : > { %v1036_v17 = vmul.f32 %v2695_v60, %v2695_v60  ;;  %v946_v28 = vmax.f32 %v2698_v23, 0.0 }
 0x2ab   : > { %v960_v1 = vpop.xlane.xlu1 %959  ;;  %1053 = vadd.xlane.f32.xlu0 %v1036_v17  ;;  %969 = vadd.xlane.f32.xlu2 %v946_v28 }
 0x2ac   : > { %v989_v40 = vmul.f32 0.03125, %v960_v1  ;;  %v2047_v1 = vld [vmem:[%s3340_s5] sm:$0xff] }
 0x2ad   : > { %v929_v24 = vpop.f32.mrf.mxu3 }
 0x2ae   : > { %v1005_v27 = vsub.f32 %v941_v9, %v989_v40  ;;  %v2732_v52 = vadd.f32 %v2598_v42, %v929_v24 }
 0x2af   : > { %v919_v12 = vpop.f32.mrf.mxu1 }
 0x2b0   : > { %v2707_v7 = vsel %vm285_vm1, %v1005_v27, 0.0  ;;  %v2710_v15 = vadd.f32 %v2598_v42, %v919_v12  ;;  %v951_v9 = vmax.f32 %v2732_v52, 0.0 }
 0x2b1   : > { %v1037_v0 = vmul.f32 %v2707_v7, %v2707_v7 }
 0x2b2   : > { %v947_v3 = vmax.f32 %v2710_v15, 0.0 }
 0x2b3   : > { %v962_v32 = vpop.xlane.xlu2 %961  ;;  %1055 = vadd.xlane.f32.xlu0 %v1037_v0 }
 0x2b4   : > { %v990_v30 = vmul.f32 0.03125, %v962_v32  ;;  %971 = vadd.xlane.f32.xlu2 %v947_v3 }
 0x2b5   : > { %v931_v34 = vpop.f32.mrf.mxu3 }
 0x2b6   : > { %v1006_v35 = vsub.f32 %v942_v33, %v990_v30  ;;  %v2718_v36 = vadd.f32 %v2598_v42, %v931_v34 }
 0x2b7   : > { %v921_v18 = vpop.f32.mrf.mxu1 }
 0x2b8   : > { %v2722_v43 = vsel %vm285_vm1, %v1006_v35, 0.0  ;;  %v2725_v41 = vadd.f32 %v2598_v42, %v921_v18  ;;  %v952_v46 = vmax.f32 %v2718_v36, 0.0 }
 0x2b9   : > { %v1038_v38 = vmul.f32 %v2722_v43, %v2722_v43 }
 0x2ba   : > { %v948_v49 = vmax.f32 %v2725_v41, 0.0 }
 0x2bb   : > { %1057 = vadd.xlane.f32.xlu1 %v1038_v38  ;;  %v964_v45 = vpop.xlane.xlu0 %963 }
 0x2bc   : > { %v991_v48 = vmul.f32 0.03125, %v964_v45  ;;  %981 = vadd.xlane.f32.xlu2 %v952_v46  ;;  %973 = vadd.xlane.f32.xlu0 %v948_v49 }
 0x2bd   : > { %v934_v54 = vpop.f32.mrf.mxu3 }
 0x2be   : > { %v1007_v29 = vsub.f32 %v943_v39, %v991_v48  ;;  %v2770_v39 = vadd.f32 %v2598_v42, %v934_v54 }
 0x2bf   : > { %v924_v22 = vpop.f32.mrf.mxu1 }
 0x2c0   : > { %v2740_v25 = vsel %vm285_vm1, %v1007_v29, 0.0  ;;  %v2744_v2 = vadd.f32 %v2598_v42, %v924_v22  ;;  %v953_v53 = vmax.f32 %v2770_v39, 0.0 }
 0x2c1   : > { %v1039_v50 = vmul.f32 %v2740_v25, %v2740_v25 }
 0x2c2   : > { %v949_v58 = vmax.f32 %v2744_v2, 0.0 }
 0x2c3   : > { %v966_v37 = vpop.xlane.xlu1 %965  ;;  %979 = vadd.xlane.f32.xlu1 %v951_v9 }
 0x2c4   : > { %v992_v47 = vmul.f32 0.03125, %v966_v37  ;;  %975 = vadd.xlane.f32.xlu2 %v949_v58  ;;  %1059 = vadd.xlane.f32.xlu0 %v1039_v50 }
 0x2c5   : > { %v936_v51 = vpop.f32.mrf.mxu3 }
 0x2c6   : > { %v1008_v62 = vsub.f32 %v944_v55, %v992_v47  ;;  %v2756_v59 = vadd.f32 %v2598_v42, %v936_v51  ;;  %v2052_v55 = vld [vmem:[%s3340_s5 + $0x28] sm:$0xff] }
 0x2c7   : > { %v926_v11 = vpop.f32.mrf.mxu1 }
 0x2c8   : > { %v2760_v4 = vsel %vm285_vm1, %v1008_v62, 0.0  ;;  %v2763_v33 = vadd.f32 %v2598_v42, %v926_v11  ;;  %v954_v63 = vmax.f32 %v2756_v59, 0.0  ;;  %v2053_v42 = vld [vmem:[%s3340_s5 + $0x30] sm:$0xff] }
 0x2c9   : > { %v1040_v5 = vmul.f32 %v2760_v4, %v2760_v4  ;;  %1402 = vmatpush.bf16.msra.mxu2 %v2053_v42  ;;  %2064 = vmatpush.bf16.msrb.mxu3 %v2053_v42 }
 0x2ca   : > { %v950_v13 = vmax.f32 %v2763_v33, 0.0 }
 0x2cb   : > { %1061 = vadd.xlane.f32.xlu1 %v1040_v5 }
 0x2cc   : > { %985 = vadd.xlane.f32.xlu2 %v954_v63  ;;  %977 = vadd.xlane.f32.xlu0 %v950_v13 }
 0x2cd   : > { %1403 = vmatpush.bf16.msra.mxu2 %v2052_v55  ;;  %2065 = vmatpush.bf16.msrb.mxu3 %v2052_v55 }
 0x2d1   : > { %1404 = vmatpush.bf16.msra.mxu2 %v2051_v14  ;;  %2066 = vmatpush.bf16.msrb.mxu3 %v2051_v14 }
 0x2d3   : > { %983 = vadd.xlane.f32.xlu1 %v953_v53 }
 0x2d5   : > { %1405 = vmatpush.bf16.msra.mxu2 %v2050_v6  ;;  %2067 = vmatpush.bf16.msrb.mxu3 %v2050_v6 }
 0x2d9   : > { %1406 = vmatpush.bf16.msra.mxu2 %v2049_v10  ;;  %2068 = vmatpush.bf16.msrb.mxu3 %v2049_v10 }
 0x2dd   : > { %1407 = vmatpush.bf16.msra.mxu2 %v2048_v26  ;;  %2069 = vmatpush.bf16.msrb.mxu3 %v2048_v26 }
 0x2e1   : > { %1408 = vmatpush.bf16.msra.mxu2 %v2047_v1  ;;  %2070 = vmatpush.bf16.msrb.mxu3 %v2047_v1 }
 0x316   : > { %v1052_v16 = vpop.xlane.xlu2 %1051  ;;  %v968_v56 = vpop.xlane.xlu1 %967 }
 0x317   : > { %v1083_v31 = vmul.f32 0.03125, %v1052_v16  ;;  %v993_v8 = vmul.f32 0.03125, %v968_v56  ;;  %v2834_v16 = vld [vmem:[%s3339_s4 + $0x1] ss:$0 sm:$0xff] }
 0x319   : > { %v1099_v61 = vadd.f32 1e-05, %v1083_v31  ;;  %v1009_v17 = vsub.f32 %v945_v21, %v993_v8 }
 0x31b   : > { %2120 = vrsqrt.f32 %v1099_v61  ;;  %v2807_v40 = vsel %vm285_vm1, %v1009_v17, 0.0  ;;  %vm1121_vm6 = vweird.f32 %v1099_v61 }
 0x31c   : > { %v1041_v27 = vmul.f32 %v2807_v40, %v2807_v40 }
 0x31e   : > { %v1054_v24 = vpop.xlane.xlu0 %1053  ;;  %v970_v0 = vpop.xlane.xlu2 %969  ;;  %1063 = vadd.xlane.f32.xlu0 %v1041_v27 }
 0x31f   : > { %v1084_v12 = vmul.f32 0.03125, %v1054_v24  ;;  %v994_v20 = vmul.f32 0.03125, %v970_v0  ;;  %v2852_v0 = vld [vmem:[%s3339_s4 + $0x2] ss:$0 sm:$0xff] }
 0x321   : > { %v2121_v32 = vpop.eup %2120  ;;  %v1100_v21 = vadd.f32 1e-05, %v1084_v12  ;;  %v1010_v35 = vsub.f32 %v946_v28, %v994_v20 }
 0x322   : > { %v1116_v30 = vmul.f32 %v2121_v32, %v1099_v61  ;;  %vm1122_vm5 = vweird.f32 %v2121_v32 }
 0x323   : > { %2122 = vrsqrt.f32 %v1100_v21  ;;  %v2815_v18 = vsel %vm285_vm1, %v1010_v35, 0.0  ;;  %vm1123_vm7 = vmor %vm1121_vm6, %vm1122_vm5  ;;  %vm1131_vm9 = vweird.f32 %v1100_v21 }
 0x324   : > { %v1117_v34 = vmul.f32 %v2121_v32, %v1116_v30  ;;  %v1042_v45 = vmul.f32 %v2815_v18, %v2815_v18 }
 0x326   : > { %v1118_v38 = vmul.f32 0.5, %v1117_v34  ;;  %v1056_v48 = vpop.xlane.xlu0 %1055  ;;  %1065 = vadd.xlane.f32.xlu1 %v1042_v45 }
 0x327   : > { %v1085_v29 = vmul.f32 0.03125, %v1056_v48  ;;  %v972_v22 = vpop.xlane.xlu2 %971 }
 0x328   : > { %v1119_v54 = vsub.f32 1.5, %v1118_v38  ;;  %v995_v37 = vmul.f32 0.03125, %v972_v22 }
 0x329   : > { %v2123_v50 = vpop.eup %2122  ;;  %v2819_v23 = vadd.f32 1e-05, %v1085_v29 }
 0x32a   : > { %v1120_v28 = vmul.f32 %v2121_v32, %v1119_v54  ;;  %v1126_v47 = vmul.f32 %v2123_v50, %v1100_v21  ;;  %v1011_v62 = vsub.f32 %v947_v3, %v995_v37  ;;  %vm1132_vm8 = vweird.f32 %v2123_v50 }
 0x32b   : > { %2124 = vrsqrt.f32 %v2819_v23  ;;  %vm1133_vm10 = vmor %vm1131_vm9, %vm1132_vm8  ;;  %vm1141_vm12 = vweird.f32 %v2819_v23 }
 0x32c   : > { %v1127_v51 = vmul.f32 %v2123_v50, %v1126_v47  ;;  %v2826_v11 = vsel %vm285_vm1, %v1011_v62, 0.0  ;;  %v1124_v5 = vsel %vm1123_vm7, %v2121_v32, %v1120_v28 }
 0x32d   : > { %v1043_v55 = vmul.f32 %v2826_v11, %v2826_v11  ;;  %v1275_v3 = vmul.f32 %v1124_v5, %v2681_v19 }
 0x32e   : > { %v1128_v57 = vmul.f32 0.5, %v1127_v51  ;;  %v1058_v42 = vpop.xlane.xlu1 %1057 }
 0x32f   : > { %v1086_v14 = vmul.f32 0.03125, %v1058_v42  ;;  %v982_v10 = vpop.xlane.xlu2 %981  ;;  %1067 = vadd.xlane.f32.xlu2 %v1043_v55  ;;  %v974_v15 = vpop.xlane.xlu0 %973  ;;  %v1293_v12 = vmul.f32 %v2834_v16, %v1275_v3 }
 0x330   : > { %v1129_v6 = vsub.f32 1.5, %v1128_v57  ;;  %v1000_v56 = vmul.f32 0.03125, %v982_v10  ;;  %v996_v61 = vmul.f32 0.03125, %v974_v15 }
 0x331   : > { %v2836_v31 = vpop.eup %2124  ;;  %v2838_v26 = vadd.f32 1e-05, %v1086_v14  ;;  %v1311_v48 = vadd.f32 %v2852_v0, %v1293_v12 }
 0x332   : > { %v1130_v8 = vmul.f32 %v2123_v50, %v1129_v6  ;;  %v1136_v17 = vmul.f32 %v2836_v31, %v2819_v23  ;;  %v1016_v19 = vsub.f32 %v952_v46, %v1000_v56  ;;  %v1012_v1 = vsub.f32 %v948_v49, %v996_v61 }
 0x333   : > { %2126 = vrsqrt.f32 %v2838_v26  ;;  %vm1142_vm11 = vweird.f32 %v2836_v31  ;;  %vm1151_vm15 = vweird.f32 %v2838_v26 }
 0x334   : > { %v1137_v27 = vmul.f32 %v2836_v31, %v1136_v17  ;;  %v1134_v24 = vsel %vm1133_vm10, %v2123_v50, %v1130_v8  ;;  %v2856_v32 = vsel %vm285_vm1, %v1016_v19, 0.0  ;;  %v2860_v36 = vsel %vm285_vm1, %v1012_v1, 0.0  ;;  %vm2884_vm13 = vmor %vm1141_vm12, %vm1142_vm11 }
 0x335   : > { %v1276_v41 = vmul.f32 %v1134_v24, %v2695_v60  ;;  %v1048_v20 = vmul.f32 %v2856_v32, %v2856_v32  ;;  %v1044_v21 = vmul.f32 %v2860_v36, %v2860_v36 }
 0x336   : > { %v1138_v46 = vmul.f32 0.5, %v1137_v27  ;;  %v980_v49 = vpop.xlane.xlu1 %979 }
 0x337   : > { %v999_v30 = vmul.f32 0.03125, %v980_v49  ;;  %v1294_v35 = vmul.f32 %v2834_v16, %v1276_v41  ;;  %1077 = vadd.xlane.f32.xlu2 %v1048_v20  ;;  %v976_v38 = vpop.xlane.xlu2 %975  ;;  %1069 = vadd.xlane.f32.xlu0 %v1044_v21  ;;  %v1060_v45 = vpop.xlane.xlu0 %1059 }
 0x338   : > { %v1139_v34 = vsub.f32 1.5, %v1138_v46  ;;  %v997_v54 = vmul.f32 0.03125, %v976_v38  ;;  %v1087_v22 = vmul.f32 0.03125, %v1060_v45 }
 0x339   : > { %v2127_v29 = vpop.eup %2126  ;;  %v1015_v60 = vsub.f32 %v951_v9, %v999_v30  ;;  %v1312_v50 = vadd.f32 %v2852_v0, %v1294_v35 }
 0x33a   : > { %v1140_v37 = vmul.f32 %v2836_v31, %v1139_v34  ;;  %v1146_v28 = vmul.f32 %v2127_v29, %v2838_v26  ;;  %v1013_v47 = vsub.f32 %v949_v58, %v997_v54  ;;  %v1103_v62 = vadd.f32 1e-05, %v1087_v22 }
 0x33b   : > { %v1327_v51 = vpack.c.bf16 %v1312_v50, %v1311_v48  ;;  %v2879_v5 = vsel %vm285_vm1, %v1015_v60, 0.0  ;;  %vm1152_vm14 = vweird.f32 %v2127_v29 }
 0x33c   : > { %v1147_v52 = vmul.f32 %v2127_v29, %v1146_v28  ;;  %v1047_v9 = vmul.f32 %v2879_v5, %v2879_v5  ;;  %2128 = vrsqrt.f32 %v1103_v62  ;;  %v2890_v2 = vsel %vm285_vm1, %v1013_v47, 0.0  ;;  %vm1153_vm0 = vmor %vm1151_vm15, %vm1152_vm14 }
 0x33d   : > { %1409 = vmatmul.bf16.vlgmr.msra.gmra.mxu2 %v1327_v51  ;;  %v1045_v23 = vmul.f32 %v2890_v2, %v2890_v2  ;;  %v1144_v55 = vsel %vm2884_vm13, %v2836_v31, %v1140_v37  ;;  %vm1161_vm3 = vweird.f32 %v1103_v62 }
 0x33e   : > { %v1148_v58 = vmul.f32 0.5, %v1147_v52  ;;  %1075 = vadd.xlane.f32.xlu1 %v1047_v9  ;;  %v1062_v42 = vpop.xlane.xlu1 %1061  ;;  %v1277_v8 = vmul.f32 %v1144_v55, %v2707_v7 }
 0x33f   : > { %v1088_v14 = vmul.f32 0.03125, %v1062_v42  ;;  %v986_v10 = vpop.xlane.xlu2 %985  ;;  %1071 = vadd.xlane.f32.xlu0 %v1045_v23  ;;  %v978_v15 = vpop.xlane.xlu0 %977 }
 0x340   : > { %v1149_v6 = vsub.f32 1.5, %v1148_v58  ;;  %v1002_v56 = vmul.f32 0.03125, %v986_v10  ;;  %v998_v61 = vmul.f32 0.03125, %v978_v15  ;;  %v1295_v41 = vmul.f32 %v2834_v16, %v1277_v8 }
 0x341   : > { %v1104_v3 = vadd.f32 1e-05, %v1088_v14 }
 0x342   : > { %v1150_v17 = vmul.f32 %v2127_v29, %v1149_v6  ;;  %v2129_v19 = vpop.eup %2128  ;;  %v1018_v31 = vsub.f32 %v954_v63, %v1002_v56  ;;  %v1014_v1 = vsub.f32 %v950_v13, %v998_v61  ;;  %v1313_v30 = vadd.f32 %v2852_v0, %v1295_v41 }
 0x343   : > { %2130 = vrsqrt.f32 %v1104_v3  ;;  %v1156_v27 = vmul.f32 %v2129_v19, %v1103_v62  ;;  %vm1162_vm2 = vweird.f32 %v2129_v19  ;;  %vm1171_vm6 = vweird.f32 %v1104_v3 }
 0x344   : > { %v1154_v24 = vsel %vm1153_vm0, %v2127_v29, %v1150_v17  ;;  %v2905_v12 = vsel %vm285_vm1, %v1018_v31, 0.0  ;;  %v2909_v7 = vsel %vm285_vm1, %v1014_v1, 0.0  ;;  %vm1163_vm4 = vmor %vm1161_vm3, %vm1162_vm2 }
 0x345   : > { %v1278_v26 = vmul.f32 %v1154_v24, %v2722_v43  ;;  %v1157_v46 = vmul.f32 %v2129_v19, %v1156_v27  ;;  %v1050_v33 = vmul.f32 %v2905_v12, %v2905_v12  ;;  %v1046_v63 = vmul.f32 %v2909_v7, %v2909_v7 }
 0x346   : > { %v984_v59 = vpop.xlane.xlu1 %983 }
 0x347   : > { %v1001_v13 = vmul.f32 0.03125, %v984_v59  ;;  %v1296_v49 = vmul.f32 %v2834_v16, %v1278_v26  ;;  %v1158_v20 = vmul.f32 0.5, %v1157_v46  ;;  %1081 = vadd.xlane.f32.xlu0 %v1050_v33  ;;  %1073 = vadd.xlane.f32.xlu1 %v1046_v63 }
 0x349   : > { %v2131_v21 = vpop.eup %2130  ;;  %v1017_v43 = vsub.f32 %v953_v53, %v1001_v13  ;;  %v1314_v35 = vadd.f32 %v2852_v0, %v1296_v49  ;;  %v1159_v34 = vsub.f32 1.5, %v1158_v20 }
 0x34a   : > { %v1166_v38 = vmul.f32 %v2131_v21, %v1104_v3  ;;  %vm1172_vm5 = vweird.f32 %v2131_v21 }
 0x34b   : > { %v1328_v45 = vpack.c.bf16 %v1314_v35, %v1313_v30  ;;  %v2924_v48 = vsel %vm285_vm1, %v1017_v43, 0.0  ;;  %v1160_v29 = vmul.f32 %v2129_v19, %v1159_v34  ;;  %vm1173_vm7 = vmor %vm1171_vm6, %vm1172_vm5  ;;  %vm1450_vm6 = vcmask 64512  }
 0x34c   : > { %v1167_v60 = vmul.f32 %v2131_v21, %v1166_v38  ;;  %v1049_v54 = vmul.f32 %v2924_v48, %v2924_v48 }
 0x34d   : > { %1414 = vmatmul.bf16.gmra.mxu2 %v1328_v45  ;;  %v1164_v53 = vsel %vm1163_vm4, %v2129_v19, %v1160_v29 }
 0x34e   : > { %v1168_v39 = vmul.f32 0.5, %v1167_v60  ;;  %1079 = vadd.xlane.f32.xlu2 %v1049_v54  ;;  %v1279_v50 = vmul.f32 %v1164_v53, %v2740_v25 }
 0x350   : > { %v1169_v22 = vsub.f32 1.5, %v1168_v39  ;;  %v1297_v47 = vmul.f32 %v2834_v16, %v1279_v50 }
 0x352   : > { %v1170_v37 = vmul.f32 %v2131_v21, %v1169_v22  ;;  %v1315_v51 = vadd.f32 %v2852_v0, %v1297_v47 }
 0x354   : > { %v1174_v44 = vsel %vm1173_vm7, %v2131_v21, %v1170_v37 }
 0x355   : > { %v1280_v28 = vmul.f32 %v1174_v44, %v2760_v4 }
 0x357   : > { %v1298_v62 = vmul.f32 %v2834_v16, %v1280_v28 }
 0x359   : > { %v1316_v52 = vadd.f32 %v2852_v0, %v1298_v62 }
 0x35b   : > { %v1329_v9 = vpack.c.bf16 %v1316_v52, %v1315_v51 }
 0x35d   : > { %1419 = vmatmul.bf16.gmra.mxu2 %v1329_v9 }
 0x391   : > { %v1064_v57 = vpop.xlane.xlu0 %1063 }
 0x392   : > { %v1089_v58 = vmul.f32 0.03125, %v1064_v57 }
 0x394   : > { %v1105_v42 = vadd.f32 1e-05, %v1089_v58 }
 0x396   : > { %2132 = vrsqrt.f32 %v1105_v42  ;;  %vm1181_vm8 = vweird.f32 %v1105_v42 }
 0x399   : > { %v1066_v25 = vpop.xlane.xlu1 %1065 }
 0x39a   : > { %v1090_v23 = vmul.f32 0.03125, %v1066_v25 }
 0x39c   : > { %v2133_v55 = vpop.eup %2132  ;;  %v1106_v14 = vadd.f32 1e-05, %v1090_v23 }
 0x39d   : > { %v1176_v6 = vmul.f32 %v2133_v55, %v1105_v42  ;;  %vm1182_vm1 = vweird.f32 %v2133_v55 }
 0x39e   : > { %2134 = vrsqrt.f32 %v1106_v14  ;;  %vm1183_vm9 = vmor %vm1181_vm8, %vm1182_vm1  ;;  %vm1191_vm11 = vweird.f32 %v1106_v14 }
 0x39f   : > { %v1177_v4 = vmul.f32 %v2133_v55, %v1176_v6 }
 0x3a1   : > { %v1178_v10 = vmul.f32 0.5, %v1177_v4 }
 0x3a2   : > { %v1068_v15 = vpop.xlane.xlu2 %1067 }
 0x3a3   : > { %v1091_v3 = vmul.f32 0.03125, %v1068_v15  ;;  %v1179_v56 = vsub.f32 1.5, %v1178_v10 }
 0x3a4   : > { %v2135_v61 = vpop.eup %2134 }
 0x3a5   : > { %v1107_v8 = vadd.f32 1e-05, %v1091_v3  ;;  %v1186_v17 = vmul.f32 %v2135_v61, %v1106_v14  ;;  %v1180_v19 = vmul.f32 %v2133_v55, %v1179_v56  ;;  %vm1192_vm10 = vweird.f32 %v2135_v61  ;;  %v2960_v3 = vld [vmem:[%s3341_s6] ss:$0 sm:$0xff] }
 0x3a6   : > { %vm1193_vm12 = vmor %vm1191_vm11, %vm1192_vm10 }
 0x3a7   : > { %2136 = vrsqrt.f32 %v1107_v8  ;;  %v1187_v31 = vmul.f32 %v2135_v61, %v1186_v17  ;;  %v1184_v46 = vsel %vm1183_vm9, %v2133_v55, %v1180_v19  ;;  %vm1201_vm14 = vweird.f32 %v1107_v8 }
 0x3a8   : > { %v1281_v21 = vmul.f32 %v1184_v46, %v2807_v40 }
 0x3a9   : > { %v1188_v1 = vmul.f32 0.5, %v1187_v31 }
 0x3aa   : > { %v1078_v27 = vpop.xlane.xlu2 %1077  ;;  %v1070_v24 = vpop.xlane.xlu0 %1069  ;;  %v1299_v60 = vmul.f32 %v2834_v16, %v1281_v21 }
 0x3ab   : > { %v1096_v26 = vmul.f32 0.03125, %v1078_v27  ;;  %v1092_v41 = vmul.f32 0.03125, %v1070_v24  ;;  %v1189_v59 = vsub.f32 1.5, %v1188_v1 }
 0x3ac   : > { %v1317_v47 = vadd.f32 %v2852_v0, %v1299_v60 }
 0x3ad   : > { %v2137_v33 = vpop.eup %2136  ;;  %v1112_v63 = vadd.f32 1e-05, %v1096_v26  ;;  %v2934_v13 = vadd.f32 1e-05, %v1092_v41  ;;  %v1190_v49 = vmul.f32 %v2135_v61, %v1189_v59 }
 0x3ae   : > { %v1196_v20 = vmul.f32 %v2137_v33, %v1107_v8  ;;  %vm1202_vm13 = vweird.f32 %v2137_v33 }
 0x3af   : > { %2138 = vrsqrt.f32 %v1112_v63  ;;  %v1194_v35 = vsel %vm1193_vm12, %v2135_v61, %v1190_v49  ;;  %vm2950_vm15 = vmor %vm1201_vm14, %vm1202_vm13  ;;  %vm1251_vm3 = vweird.f32 %v1112_v63  ;;  %vm1211_vm5 = vweird.f32 %v2934_v13 }
 0x3b0   : > { %v1197_v43 = vmul.f32 %v2137_v33, %v1196_v20  ;;  %2140 = vrsqrt.f32 %v2934_v13  ;;  %v1282_v38 = vmul.f32 %v1194_v35, %v2815_v18 }
 0x3b1   : > { %v1076_v30 = vpop.xlane.xlu1 %1075 }
 0x3b2   : > { %v1095_v34 = vmul.f32 0.03125, %v1076_v30  ;;  %v1198_v45 = vmul.f32 0.5, %v1197_v43  ;;  %v1072_v29 = vpop.xlane.xlu0 %1071  ;;  %v1300_v53 = vmul.f32 %v2834_v16, %v1282_v38 }
 0x3b3   : > { %v1093_v39 = vmul.f32 0.03125, %v1072_v29 }
 0x3b4   : > { %v2940_v54 = vadd.f32 1e-05, %v1095_v34  ;;  %v1199_v40 = vsub.f32 1.5, %v1198_v45  ;;  %v1318_v37 = vadd.f32 %v2852_v0, %v1300_v53 }
 0x3b5   : > { %v2139_v22 = vpop.eup %2138  ;;  %v2944_v50 = vadd.f32 1e-05, %v1093_v39 }
 0x3b6   : > { %2142 = vrsqrt.f32 %v2940_v54  ;;  %v2141_v44 = vpop.eup %2140  ;;  %v1200_v28 = vmul.f32 %v2137_v33, %v1199_v40  ;;  %v1246_v18 = vmul.f32 %v2139_v22, %v1112_v63  ;;  %v1330_v52 = vpack.c.bf16 %v1318_v37, %v1317_v47 }
 0x3b7   : > { %v1206_v62 = vmul.f32 %v2141_v44, %v2934_v13  ;;  %2144 = vrsqrt.f32 %v2944_v50  ;;  %vm1252_vm0 = vweird.f32 %v2139_v22  ;;  %vm1212_vm2 = vweird.f32 %v2141_v44 }
 0x3b8   : > { %v1247_v51 = vmul.f32 %v2139_v22, %v1246_v18  ;;  %1424 = vmatmul.bf16.gmra.mxu2 %v1330_v52  ;;  %v1204_v23 = vsel %vm2950_vm15, %v2137_v33, %v1200_v28  ;;  %vm2971_vm4 = vmor %vm1251_vm3, %vm1252_vm0  ;;  %vm1241_vm8 = vweird.f32 %v2940_v54  ;;  %vm1221_vm11 = vweird.f32 %v2944_v50 }
 0x3b9   : > { %v1207_v57 = vmul.f32 %v2141_v44, %v1206_v62  ;;  %v1283_v19 = vmul.f32 %v1204_v23, %v2826_v11  ;;  %vm1213_vm7 = vmor %vm1211_vm5, %vm1212_vm2 }
 0x3ba   : > { %v1248_v58 = vmul.f32 0.5, %v1247_v51  ;;  %v1074_v42 = vpop.xlane.xlu1 %1073  ;;  %v1082_v25 = vpop.xlane.xlu0 %1081 }
 0x3bb   : > { %v1208_v14 = vmul.f32 0.5, %v1207_v57  ;;  %v1094_v6 = vmul.f32 0.03125, %v1074_v42  ;;  %v1098_v4 = vmul.f32 0.03125, %v1082_v25  ;;  %v1301_v20 = vmul.f32 %v2834_v16, %v1283_v19 }
 0x3bc   : > { %v2143_v55 = vpop.eup %2142  ;;  %v1249_v10 = vsub.f32 1.5, %v1248_v58 }
 0x3bd   : > { %v1236_v15 = vmul.f32 %v2143_v55, %v2940_v54  ;;  %v2962_v56 = vpop.eup %2144  ;;  %v1209_v61 = vsub.f32 1.5, %v1208_v14  ;;  %v2964_v8 = vadd.f32 1e-05, %v1094_v6  ;;  %v2966_v17 = vadd.f32 1e-05, %v1098_v4 }
 0x3be   : > { %v1250_v31 = vmul.f32 %v2139_v22, %v1249_v10  ;;  %v1216_v27 = vmul.f32 %v2962_v56, %v2944_v50  ;;  %vm1242_vm1 = vweird.f32 %v2143_v55  ;;  %vm1222_vm10 = vweird.f32 %v2962_v56 }
 0x3bf   : > { %v1237_v1 = vmul.f32 %v2143_v55, %v1236_v15  ;;  %v1210_v26 = vmul.f32 %v2141_v44, %v1209_v61  ;;  %2146 = vrsqrt.f32 %v2964_v8  ;;  %vm1243_vm9 = vmor %vm1241_vm8, %vm1242_vm1  ;;  %vm1231_vm15 = vweird.f32 %v2964_v8 }
 0x3c0   : > { %v1410_v41 = vpop.f32.mrf.mxu2  ;;  %v1254_v11 = vsel %vm2971_vm4, %v2139_v22, %v1250_v31  ;;  %v1217_v59 = vmul.f32 %v2962_v56, %v1216_v27  ;;  %2148 = vrsqrt.f32 %v2966_v17  ;;  %vm3007_vm12 = vmor %vm1221_vm11, %vm1222_vm10  ;;  %vm1271_vm2 = vweird.f32 %v2966_v17 }
 0x3c1   : > { %v1238_v46 = vmul.f32 0.5, %v1237_v1  ;;  %v1080_v33 = vpop.xlane.xlu2 %1079  ;;  %v2983_v63 = vadd.f32 %v2960_v3, %v1410_v41  ;;  %v1214_v13 = vsel %vm1213_vm7, %v2141_v44, %v1210_v26  ;;  %v1288_v35 = vmul.f32 %v1254_v11, %v2856_v32 }
 0x3c2   : > { %v1097_v49 = vmul.f32 0.03125, %v1080_v33  ;;  %v1218_v43 = vmul.f32 0.5, %v1217_v59  ;;  %v1284_v30 = vmul.f32 %v1214_v13, %v2860_v36  ;;  %v1319_v36 = vadd.f32 %v2852_v0, %v1301_v20 }
 0x3c3   : > { %v1239_v21 = vsub.f32 1.5, %v1238_v46  ;;  %v1451_v38 = vsel %vm1450_vm6, %v2983_v63, 0.0  ;;  %v1306_v18 = vmul.f32 %v2834_v16, %v1288_v35 }
 0x3c4   : > { %v2988_v34 = vadd.f32 1e-05, %v1097_v49  ;;  %v1219_v29 = vsub.f32 1.5, %v1218_v43  ;;  %1452 = vadd.xlane.f32.xlu1 %v1451_v38  ;;  %v1302_v60 = vmul.f32 %v2834_v16, %v1284_v30 }
 0x3c5   : > { %v1240_v45 = vmul.f32 %v2143_v55, %v1239_v21  ;;  %v2147_v39 = vpop.eup %2146 }
 0x3c6   : > { %2150 = vrsqrt.f32 %v2988_v34  ;;  %v2149_v53 = vpop.eup %2148  ;;  %v1220_v40 = vmul.f32 %v2962_v56, %v1219_v29  ;;  %v1226_v22 = vmul.f32 %v2147_v39, %v2964_v8  ;;  %v1320_v28 = vadd.f32 %v2852_v0, %v1302_v60 }
 0x3c7   : > { %v1244_v32 = vsel %vm1243_vm9, %v2143_v55, %v1240_v45  ;;  %v1266_v37 = vmul.f32 %v2149_v53, %v2966_v17  ;;  %v1324_v55 = vadd.f32 %v2852_v0, %v1306_v18  ;;  %vm1232_vm13 = vweird.f32 %v2147_v39 }
 0x3c8   : > { %v1287_v54 = vmul.f32 %v1244_v32, %v2879_v5  ;;  %v1412_v44 = vpop.f32.mrf.mxu2  ;;  %v1227_v47 = vmul.f32 %v2147_v39, %v1226_v22  ;;  %v1331_v9 = vpack.c.bf16 %v1320_v28, %v1319_v36  ;;  %v1224_v50 = vsel %vm3007_vm12, %v2962_v56, %v1220_v40  ;;  %vm1233_vm0 = vmor %vm1231_vm15, %vm1232_vm13 }
 0x3c9   : > { %v3005_v62 = vadd.f32 %v2960_v3, %v1412_v44  ;;  %v1267_v52 = vmul.f32 %v2149_v53, %v1266_v37  ;;  %vm1272_vm14 = vweird.f32 %v2149_v53  ;;  %v1285_v15 = vmul.f32 %v1224_v50, %v2890_v2 }
 0x3ca   : > { %v1305_v5 = vmul.f32 %v2834_v16, %v1287_v54  ;;  %v1228_v57 = vmul.f32 0.5, %v1227_v47  ;;  %1429 = vmatmul.bf16.gmra.mxu2 %v1331_v9  ;;  %vm1273_vm3 = vmor %vm1271_vm2, %vm1272_vm14  ;;  %vm1261_vm5 = vweird.f32 %v2988_v34 }
 0x3cb   : > { %v1454_v58 = vsel %vm1450_vm6, %v3005_v62, 0.0  ;;  %v1268_v25 = vmul.f32 0.5, %v1267_v52  ;;  %v1303_v2 = vmul.f32 %v2834_v16, %v1285_v15 }
 0x3cc   : > { %v2151_v42 = vpop.eup %2150  ;;  %1455 = vadd.xlane.f32.xlu2 %v1454_v58  ;;  %v1323_v23 = vadd.f32 %v2852_v0, %v1305_v5  ;;  %v1229_v14 = vsub.f32 1.5, %v1228_v57 }
 0x3cd   : > { %v1256_v6 = vmul.f32 %v2151_v42, %v2988_v34  ;;  %v1269_v4 = vsub.f32 1.5, %v1268_v25  ;;  %vm1262_vm4 = vweird.f32 %v2151_v42  ;;  %v1321_v33 = vadd.f32 %v2852_v0, %v1303_v2 }
 0x3ce   : > { %v1333_v10 = vpack.c.bf16 %v1324_v55, %v1323_v23  ;;  %v1230_v61 = vmul.f32 %v2147_v39, %v1229_v14  ;;  %vm1263_vm7 = vmor %vm1261_vm5, %vm1262_vm4 }
 0x3cf   : > { %v1257_v56 = vmul.f32 %v2151_v42, %v1256_v6  ;;  %v1270_v19 = vmul.f32 %v2149_v53, %v1269_v4 }
 0x3d0   : > { %v1415_v31 = vpop.f32.mrf.mxu2  ;;  %1439 = vmatmul.bf16.vlgmr.msrb.gmra.mxu3 %v1333_v10  ;;  %v1234_v24 = vsel %vm1233_vm0, %v2147_v39, %v1230_v61 }
 0x3d1   : > { %v1258_v1 = vmul.f32 0.5, %v1257_v56  ;;  %v3024_v27 = vadd.f32 %v2960_v3, %v1415_v31  ;;  %v1286_v26 = vmul.f32 %v1234_v24, %v2909_v7  ;;  %v1274_v41 = vsel %vm1273_vm3, %v2149_v53, %v1270_v19 }
 0x3d2   : > { %v1290_v46 = vmul.f32 %v1274_v41, %v2905_v12 }
 0x3d3   : > { %v1259_v11 = vsub.f32 1.5, %v1258_v1  ;;  %v1457_v8 = vsel %vm1450_vm6, %v3024_v27, 0.0  ;;  %v1304_v17 = vmul.f32 %v2834_v16, %v1286_v26 }
 0x3d4   : > { %1458 = vadd.xlane.f32.xlu0 %v1457_v8  ;;  %v1308_v43 = vmul.f32 %v2834_v16, %v1290_v46 }
 0x3d5   : > { %v1260_v59 = vmul.f32 %v2151_v42, %v1259_v11  ;;  %v1322_v7 = vadd.f32 %v2852_v0, %v1304_v17 }
 0x3d6   : > { %v1326_v38 = vadd.f32 %v2852_v0, %v1308_v43 }
 0x3d7   : > { %v1264_v49 = vsel %vm1263_vm7, %v2151_v42, %v1260_v59  ;;  %v1332_v20 = vpack.c.bf16 %v1322_v7, %v1321_v33 }
 0x3d8   : > { %v1417_v13 = vpop.f32.mrf.mxu2  ;;  %v1289_v21 = vmul.f32 %v1264_v49, %v2924_v48 }
 0x3d9   : > { %v3038_v30 = vadd.f32 %v2960_v3, %v1417_v13 }
 0x3da   : > { %v1307_v12 = vmul.f32 %v2834_v16, %v1289_v21  ;;  %1434 = vmatmul.bf16.gmra.mxu2 %v1332_v20 }
 0x3db   : > { %v1460_v35 = vsel %vm1450_vm6, %v3038_v30, 0.0 }
 0x3dc   : > { %1461 = vadd.xlane.f32.xlu1 %v1460_v35  ;;  %v1325_v34 = vadd.f32 %v2852_v0, %v1307_v12 }
 0x3de   : > { %v1334_v45 = vpack.c.bf16 %v1326_v38, %v1325_v34 }
 0x3e0   : > { %v1420_v29 = vpop.f32.mrf.mxu2  ;;  %1444 = vmatmul.bf16.gmra.mxu3 %v1334_v45 }
 0x3e1   : > { %v3046_v48 = vadd.f32 %v2960_v3, %v1420_v29 }
 0x3e3   : > { %v1463_v60 = vsel %vm1450_vm6, %v3046_v48, 0.0 }
 0x3e4   : > { %1464 = vadd.xlane.f32.xlu2 %v1463_v60 }
 0x3e8   : > { %v1422_v16 = vpop.f32.mrf.mxu2 }
 0x3e9   : > { %v3051_v39 = vadd.f32 %v2960_v3, %v1422_v16 }
 0x3eb   : > { %v1466_v36 = vsel %vm1450_vm6, %v3051_v39, 0.0 }
 0x3ec   : > { %1467 = vadd.xlane.f32.xlu0 %v1466_v36 }
 0x437   : > { %v1453_v50 = vpop.xlane.xlu1 %1452 }
 0x438   : > { %v1499_v55 = vmul.f32 0.125, %v1453_v50 }
 0x43a   : > { %v3092_v15 = vsub.f32 %v2983_v63, %v1499_v55 }
 0x43b   : > { %v1425_v53 = vpop.f32.mrf.mxu2 }
 0x43c   : > { %v3056_v0 = vadd.f32 %v2960_v3, %v1425_v53  ;;  %v1531_v63 = vmul.f32 %v3092_v15, %v3092_v15 }
 0x43e   : > { %v1469_v32 = vsel %vm1450_vm6, %v3056_v0, 0.0  ;;  %v1547_v33 = vsel %vm1450_vm6, %v1531_v63, 0.0 }
 0x43f   : > { %1470 = vadd.xlane.f32.xlu1 %v1469_v32  ;;  %v1456_v61 = vpop.xlane.xlu2 %1455 }
 0x440   : > { %v1500_v2 = vmul.f32 0.125, %v1456_v61 }
 0x442   : > { %v3112_v59 = vsub.f32 %v3005_v62, %v1500_v2 }
 0x443   : > { %v1427_v40 = vpop.f32.mrf.mxu2 }
 0x444   : > { %v3061_v22 = vadd.f32 %v2960_v3, %v1427_v40  ;;  %v1532_v20 = vmul.f32 %v3112_v59, %v3112_v59 }
 0x446   : > { %v1472_v54 = vsel %vm1450_vm6, %v3061_v22, 0.0  ;;  %v1550_v34 = vsel %vm1450_vm6, %v1532_v20, 0.0 }
 0x447   : > { %1473 = vadd.xlane.f32.xlu2 %v1472_v54  ;;  %v1459_v6 = vpop.xlane.xlu0 %1458 }
 0x448   : > { %v1501_v56 = vmul.f32 0.125, %v1459_v6 }
 0x44a   : > { %v3104_v41 = vsub.f32 %v3024_v27, %v1501_v56 }
 0x44d   : > { %v1430_v37 = vpop.f32.mrf.mxu2 }
 0x44e   : > { %v3066_v44 = vadd.f32 %v2960_v3, %v1430_v37 }
 0x44f   : > { %v1462_v1 = vpop.xlane.xlu1 %1461 }
 0x450   : > { %v1475_v28 = vsel %vm1450_vm6, %v3066_v44, 0.0  ;;  %v1502_v11 = vmul.f32 0.125, %v1462_v1 }
 0x451   : > { %1476 = vadd.xlane.f32.xlu0 %v1475_v28 }
 0x452   : > { %v3116_v7 = vsub.f32 %v3038_v30, %v1502_v11 }
 0x453   : > { %v1440_v18 = vpop.f32.mrf.mxu3 }
 0x454   : > { %v3076_v5 = vadd.f32 %v2960_v3, %v1440_v18  ;;  %v1534_v43 = vmul.f32 %v3116_v7, %v3116_v7 }
 0x455   : > { %v1432_v47 = vpop.f32.mrf.mxu2 }
 0x456   : > { %v3071_v51 = vadd.f32 %v2960_v3, %v1432_v47  ;;  %v1487_v42 = vsel %vm1450_vm6, %v3076_v5, 0.0  ;;  %v1556_v35 = vsel %vm1450_vm6, %v1534_v43, 0.0 }
 0x457   : > { %v1465_v13 = vpop.xlane.xlu2 %1464 }
 0x458   : > { %v1478_v52 = vsel %vm1450_vm6, %v3071_v51, 0.0  ;;  %v1503_v62 = vmul.f32 0.125, %v1465_v13 }
 0x459   : > { %1479 = vadd.xlane.f32.xlu1 %v1478_v52 }
 0x45a   : > { %v3131_v12 = vsub.f32 %v3046_v48, %v1503_v62 }
 0x45b   : > { %v1442_v9 = vpop.f32.mrf.mxu3 }
 0x45c   : > { %v3086_v14 = vadd.f32 %v2960_v3, %v1442_v9  ;;  %v1535_v45 = vmul.f32 %v3131_v12, %v3131_v12 }
 0x45d   : > { %v1435_v57 = vpop.f32.mrf.mxu2 }
 0x45e   : > { %v3079_v58 = vadd.f32 %v2960_v3, %v1435_v57  ;;  %v1490_v31 = vsel %vm1450_vm6, %v3086_v14, 0.0  ;;  %v1559_v60 = vsel %vm1450_vm6, %v1535_v45, 0.0 }
 0x45f   : > { %v1468_v46 = vpop.xlane.xlu0 %1467 }
 0x460   : > { %v1481_v25 = vsel %vm1450_vm6, %v3079_v58, 0.0  ;;  %v1504_v49 = vmul.f32 0.125, %v1468_v46 }
 0x461   : > { %1488 = vadd.xlane.f32.xlu1 %v1487_v42  ;;  %1482 = vadd.xlane.f32.xlu2 %v1481_v25 }
 0x462   : > { %v3125_v21 = vsub.f32 %v3051_v39, %v1504_v49 }
 0x463   : > { %v1445_v23 = vpop.f32.mrf.mxu3 }
 0x464   : > { %v3107_v8 = vadd.f32 %v2960_v3, %v1445_v23  ;;  %v1536_v38 = vmul.f32 %v3125_v21, %v3125_v21 }
 0x465   : > { %v1437_v4 = vpop.f32.mrf.mxu2 }
 0x466   : > { %v3089_v10 = vadd.f32 %v2960_v3, %v1437_v4  ;;  %v1493_v27 = vsel %vm1450_vm6, %v3107_v8, 0.0  ;;  %v1562_v29 = vsel %vm1450_vm6, %v1536_v38, 0.0 }
 0x468   : > { %v1484_v19 = vsel %vm1450_vm6, %v3089_v10, 0.0 }
 0x469   : > { %1485 = vadd.xlane.f32.xlu0 %v1484_v19  ;;  %1491 = vadd.xlane.f32.xlu2 %v1490_v31 }
 0x46b   : > { %v1447_v24 = vpop.f32.mrf.mxu3 }
 0x46c   : > { %v3099_v26 = vadd.f32 %v2960_v3, %v1447_v24  ;;  %v1533_v3 = vmul.f32 %v3104_v41, %v3104_v41 }
 0x46e   : > { %v1496_v17 = vsel %vm1450_vm6, %v3099_v26, 0.0  ;;  %v1553_v30 = vsel %vm1450_vm6, %v1533_v3, 0.0 }
 0x46f   : > { %1497 = vadd.xlane.f32.xlu1 %v1496_v17 }
 0x471   : > { %1548 = vadd.xlane.f32.xlu2 %v1547_v33  ;;  %1494 = vadd.xlane.f32.xlu0 %v1493_v27 }
 0x477   : > { %1554 = vadd.xlane.f32.xlu1 %v1553_v30 }
 0x479   : > { %1557 = vadd.xlane.f32.xlu2 %v1556_v35  ;;  %1551 = vadd.xlane.f32.xlu0 %v1550_v34 }
 0x47f   : > { %1563 = vadd.xlane.f32.xlu1 %v1562_v29 }
 0x481   : > { %1560 = vadd.xlane.f32.xlu0 %v1559_v60 }
 0x4b2   : > { %v1471_v48 = vpop.xlane.xlu1 %1470 }
 0x4b3   : > { %v1505_v16 = vmul.f32 0.125, %v1471_v48 }
 0x4b5   : > { %v3142_v39 = vsub.f32 %v3056_v0, %v1505_v16 }
 0x4b7   : > { %v1537_v36 = vmul.f32 %v3142_v39, %v3142_v39 }
 0x4b9   : > { %v1565_v53 = vsel %vm1450_vm6, %v1537_v36, 0.0 }
 0x4ba   : > { %v1474_v32 = vpop.xlane.xlu2 %1473  ;;  %1566 = vadd.xlane.f32.xlu2 %v1565_v53 }
 0x4bb   : > { %v1506_v40 = vmul.f32 0.125, %v1474_v32 }
 0x4bd   : > { %v3148_v54 = vsub.f32 %v3061_v22, %v1506_v40 }
 0x4bf   : > { %v1538_v37 = vmul.f32 %v3148_v54, %v3148_v54 }
 0x4c1   : > { %v1568_v28 = vsel %vm1450_vm6, %v1538_v37, 0.0 }
 0x4c2   : > { %1569 = vadd.xlane.f32.xlu0 %v1568_v28 }
 0x4c4   : > { %v1477_v18 = vpop.xlane.xlu0 %1476 }
 0x4c5   : > { %v1507_v0 = vmul.f32 0.125, %v1477_v18 }
 0x4c7   : > { %v3154_v47 = vsub.f32 %v3066_v44, %v1507_v0 }
 0x4c9   : > { %v1539_v52 = vmul.f32 %v3154_v47, %v3154_v47 }
 0x4cb   : > { %v1571_v9 = vsel %vm1450_vm6, %v1539_v52, 0.0 }
 0x4cc   : > { %v1480_v57 = vpop.xlane.xlu1 %1479  ;;  %1572 = vadd.xlane.f32.xlu1 %v1571_v9 }
 0x4cd   : > { %v1508_v22 = vmul.f32 0.125, %v1480_v57 }
 0x4cf   : > { %v3160_v50 = vsub.f32 %v3071_v51, %v1508_v22 }
 0x4d1   : > { %v1540_v42 = vmul.f32 %v3160_v50, %v3160_v50 }
 0x4d3   : > { %v1574_v25 = vsel %vm1450_vm6, %v1540_v42, 0.0 }
 0x4d4   : > { %v1489_v23 = vpop.xlane.xlu1 %1488  ;;  %1575 = vadd.xlane.f32.xlu2 %v1574_v25  ;;  %v1483_v44 = vpop.xlane.xlu2 %1482 }
 0x4d5   : > { %v1511_v55 = vmul.f32 0.125, %v1489_v23  ;;  %v1509_v6 = vmul.f32 0.125, %v1483_v44 }
 0x4d7   : > { %v3166_v4 = vsub.f32 %v3076_v5, %v1511_v55  ;;  %v3169_v61 = vsub.f32 %v3079_v58, %v1509_v6 }
 0x4d9   : > { %v1543_v51 = vmul.f32 %v3166_v4, %v3166_v4  ;;  %v1541_v56 = vmul.f32 %v3169_v61, %v3169_v61 }
 0x4db   : > { %v1583_v19 = vsel %vm1450_vm6, %v1543_v51, 0.0  ;;  %v1577_v31 = vsel %vm1450_vm6, %v1541_v56, 0.0 }
 0x4dc   : > { %1584 = vadd.xlane.f32.xlu2 %v1583_v19  ;;  %v1492_v1 = vpop.xlane.xlu2 %1491  ;;  %1578 = vadd.xlane.f32.xlu0 %v1577_v31  ;;  %v1486_v24 = vpop.xlane.xlu0 %1485  ;;  %v3212_v31 = vld [vmem:[%s3341_s6 + $0x1] ss:$0 sm:$0xff] }
 0x4dd   : > { %v1512_v2 = vmul.f32 0.125, %v1492_v1  ;;  %v1510_v5 = vmul.f32 0.125, %v1486_v24 }
 0x4df   : > { %v3178_v63 = vsub.f32 %v3086_v14, %v1512_v2  ;;  %v3181_v58 = vsub.f32 %v3089_v10, %v1510_v5 }
 0x4e1   : > { %v1544_v46 = vmul.f32 %v3178_v63, %v3178_v63  ;;  %v1542_v33 = vmul.f32 %v3181_v58, %v3181_v58 }
 0x4e2   : > { %v1498_v11 = vpop.xlane.xlu1 %1497 }
 0x4e3   : > { %v1514_v17 = vmul.f32 0.125, %v1498_v11  ;;  %v1586_v27 = vsel %vm1450_vm6, %v1544_v46, 0.0  ;;  %v1580_v3 = vsel %vm1450_vm6, %v1542_v33, 0.0 }
 0x4e4   : > { %v1549_v14 = vpop.xlane.xlu2 %1548  ;;  %1587 = vadd.xlane.f32.xlu0 %v1586_v27  ;;  %1581 = vadd.xlane.f32.xlu1 %v1580_v3  ;;  %v1495_v10 = vpop.xlane.xlu0 %1494 }
 0x4e5   : > { %v3188_v49 = vsub.f32 %v3099_v26, %v1514_v17  ;;  %v1595_v13 = vmul.f32 0.125, %v1549_v14  ;;  %v1513_v20 = vmul.f32 0.125, %v1495_v10  ;;  %v3220_v17 = vld [vmem:[%s3341_s6 + $0x2] ss:$0 sm:$0xff] }
 0x4e7   : > { %v1546_v62 = vmul.f32 %v3188_v49, %v3188_v49  ;;  %v1611_v43 = vadd.f32 1e-05, %v1595_v13  ;;  %v3195_v30 = vsub.f32 %v3107_v8, %v1513_v20 }
 0x4e9   : > { %v1592_v26 = vsel %vm1450_vm6, %v1546_v62, 0.0  ;;  %2152 = vrsqrt.f32 %v1611_v43  ;;  %v1545_v38 = vmul.f32 %v3195_v30, %v3195_v30  ;;  %vm1633_vm8 = vweird.f32 %v1611_v43 }
 0x4ea   : > { %1593 = vadd.xlane.f32.xlu2 %v1592_v26  ;;  %v1555_v35 = vpop.xlane.xlu1 %1554 }
 0x4eb   : > { %v1597_v34 = vmul.f32 0.125, %v1555_v35  ;;  %v1589_v29 = vsel %vm1450_vm6, %v1545_v38, 0.0 }
 0x4ec   : > { %v1558_v60 = vpop.xlane.xlu2 %1557  ;;  %1590 = vadd.xlane.f32.xlu1 %v1589_v29  ;;  %v1552_v48 = vpop.xlane.xlu0 %1551 }
 0x4ed   : > { %v1613_v45 = vadd.f32 1e-05, %v1597_v34  ;;  %v1598_v16 = vmul.f32 0.125, %v1558_v60  ;;  %v1596_v36 = vmul.f32 0.125, %v1552_v48 }
 0x4ef   : > { %2154 = vrsqrt.f32 %v1613_v45  ;;  %v2153_v8 = vpop.eup %2152  ;;  %v1614_v53 = vadd.f32 1e-05, %v1598_v16  ;;  %v3201_v32 = vadd.f32 1e-05, %v1596_v36  ;;  %vm1653_vm11 = vweird.f32 %v1613_v45 }
 0x4f0   : > { %v1628_v40 = vmul.f32 %v2153_v8, %v1611_v43  ;;  %vm1634_vm1 = vweird.f32 %v2153_v8 }
 0x4f1   : > { %2156 = vrsqrt.f32 %v1614_v53  ;;  %vm1635_vm9 = vmor %vm1633_vm8, %vm1634_vm1  ;;  %vm1663_vm15 = vweird.f32 %v1614_v53  ;;  %vm1643_vm2 = vweird.f32 %v3201_v32 }
 0x4f2   : > { %v1564_v37 = vpop.xlane.xlu1 %1563  ;;  %v1629_v18 = vmul.f32 %v2153_v8, %v1628_v40  ;;  %2158 = vrsqrt.f32 %v3201_v32 }
 0x4f3   : > { %v1600_v28 = vmul.f32 0.125, %v1564_v37 }
 0x4f4   : > { %v1630_v9 = vmul.f32 0.5, %v1629_v18  ;;  %v1561_v22 = vpop.xlane.xlu0 %1560 }
 0x4f5   : > { %v2155_v0 = vpop.eup %2154  ;;  %v3204_v52 = vadd.f32 1e-05, %v1600_v28  ;;  %v1599_v42 = vmul.f32 0.125, %v1561_v22 }
 0x4f6   : > { %v1648_v57 = vmul.f32 %v2155_v0, %v1613_v45  ;;  %v1631_v25 = vsub.f32 1.5, %v1630_v9  ;;  %vm1654_vm10 = vweird.f32 %v2155_v0 }
 0x4f7   : > { %2160 = vrsqrt.f32 %v3204_v52  ;;  %v2157_v44 = vpop.eup %2156  ;;  %v3207_v55 = vadd.f32 1e-05, %v1599_v42  ;;  %vm1655_vm12 = vmor %vm1653_vm11, %vm1654_vm10  ;;  %vm1683_vm5 = vweird.f32 %v3204_v52 }
 0x4f8   : > { %v1649_v23 = vmul.f32 %v2155_v0, %v1648_v57  ;;  %v2159_v6 = vpop.eup %2158  ;;  %v1632_v51 = vmul.f32 %v2153_v8, %v1631_v25  ;;  %v1658_v56 = vmul.f32 %v2157_v44, %v1614_v53  ;;  %vm1664_vm13 = vweird.f32 %v2157_v44 }
 0x4f9   : > { %v1638_v1 = vmul.f32 %v2159_v6, %v3201_v32  ;;  %2162 = vrsqrt.f32 %v3207_v55  ;;  %vm1644_vm14 = vweird.f32 %v2159_v6  ;;  %vm1665_vm0 = vmor %vm1663_vm15, %vm1664_vm13  ;;  %vm1673_vm8 = vweird.f32 %v3207_v55 }
 0x4fa   : > { %v1650_v19 = vmul.f32 0.5, %v1649_v23  ;;  %v1636_v24 = vsel %vm1635_vm9, %v2153_v8, %v1632_v51  ;;  %v1659_v2 = vmul.f32 %v2157_v44, %v1658_v56  ;;  %vm1645_vm3 = vmor %vm1643_vm2, %vm1644_vm14 }
 0x4fb   : > { %v1787_v46 = vmul.f32 %v1636_v24, %v3092_v15  ;;  %v1639_v33 = vmul.f32 %v2159_v6, %v1638_v1 }
 0x4fc   : > { %v1651_v5 = vsub.f32 1.5, %v1650_v19  ;;  %v1660_v27 = vmul.f32 0.5, %v1659_v2 }
 0x4fd   : > { %v2161_v11 = vpop.eup %2160  ;;  %v1805_v10 = vmul.f32 %v3212_v31, %v1787_v46  ;;  %v1640_v13 = vmul.f32 0.5, %v1639_v33 }
 0x4fe   : > { %v1652_v3 = vmul.f32 %v2155_v0, %v1651_v5  ;;  %v1678_v14 = vmul.f32 %v2161_v11, %v3204_v52  ;;  %v1661_v20 = vsub.f32 1.5, %v1660_v27  ;;  %vm1684_vm4 = vweird.f32 %v2161_v11 }
 0x4ff   : > { %v2163_v43 = vpop.eup %2162  ;;  %v1823_v26 = vadd.f32 %v3220_v17, %v1805_v10  ;;  %v1641_v34 = vsub.f32 1.5, %v1640_v13  ;;  %vm1685_vm7 = vmor %vm1683_vm5, %vm1684_vm4 }
 0x500   : > { %v1656_v62 = vsel %vm1655_vm12, %v2155_v0, %v1652_v3  ;;  %v1679_v15 = vmul.f32 %v2161_v11, %v1678_v14  ;;  %v1662_v38 = vmul.f32 %v2157_v44, %v1661_v20  ;;  %v1668_v29 = vmul.f32 %v2163_v43, %v3207_v55 }
 0x501   : > { %v1789_v35 = vmul.f32 %v1656_v62, %v3104_v41  ;;  %1839 = vst.msk [vmem:[%s3228_s28] sm:$0xff] %vm1450_vm6, %v1823_v26  ;;  %v1642_v48 = vmul.f32 %v2159_v6, %v1641_v34  ;;  %vm1674_vm1 = vweird.f32 %v2163_v43 }
 0x502   : > { %v1680_v45 = vmul.f32 0.5, %v1679_v15  ;;  %v1666_v16 = vsel %vm1665_vm0, %v2157_v44, %v1662_v38  ;;  %v1669_v41 = vmul.f32 %v2163_v43, %v1668_v29  ;;  %vm1675_vm9 = vmor %vm1673_vm8, %vm1674_vm1 }
 0x503   : > { %v1807_v60 = vmul.f32 %v3212_v31, %v1789_v35  ;;  %v1790_v8 = vmul.f32 %v1666_v16, %v3116_v7  ;;  %v1646_v40 = vsel %vm1645_vm3, %v2159_v6, %v1642_v48 }
 0x504   : > { %v1681_v36 = vsub.f32 1.5, %v1680_v45  ;;  %v1788_v37 = vmul.f32 %v1646_v40, %v3112_v59  ;;  %v1670_v18 = vmul.f32 0.5, %v1669_v41 }
 0x505   : > { %v1825_v53 = vadd.f32 %v3220_v17, %v1807_v60  ;;  %v1808_v32 = vmul.f32 %v3212_v31, %v1790_v8 }
 0x506   : > { %v1682_v28 = vmul.f32 %v2161_v11, %v1681_v36  ;;  %v1806_v0 = vmul.f32 %v3212_v31, %v1788_v37  ;;  %v1671_v9 = vsub.f32 1.5, %v1670_v18 }
 0x507   : > { %1841 = vst.msk [vmem:[%s3228_s28 + $0x10] sm:$0xff] %vm1450_vm6, %v1825_v53  ;;  %v1826_v59 = vadd.f32 %v3220_v17, %v1808_v32 }
 0x508   : > { %v1686_v7 = vsel %vm1685_vm7, %v2161_v11, %v1682_v28  ;;  %v1824_v52 = vadd.f32 %v3220_v17, %v1806_v0  ;;  %v1672_v22 = vmul.f32 %v2163_v43, %v1671_v9 }
 0x509   : > { %v1792_v57 = vmul.f32 %v1686_v7, %v3125_v21  ;;  %1842 = vst.msk [vmem:[%s3228_s28 + $0x18] sm:$0xff] %vm1450_vm6, %v1826_v59 }
 0x50a   : > { %1840 = vst.msk [vmem:[%s3228_s28 + $0x8] sm:$0xff] %vm1450_vm6, %v1824_v52  ;;  %v1676_v25 = vsel %vm1675_vm9, %v2163_v43, %v1672_v22 }
 0x50b   : > { %v1810_v42 = vmul.f32 %v3212_v31, %v1792_v57  ;;  %v1791_v44 = vmul.f32 %v1676_v25, %v3131_v12 }
 0x50d   : > { %v1828_v23 = vadd.f32 %v3220_v17, %v1810_v42  ;;  %v1809_v21 = vmul.f32 %v3212_v31, %v1791_v44 }
 0x50f   : > { %1844 = vst.msk [vmem:[%s3228_s28 + $0x28] sm:$0xff] %vm1450_vm6, %v1828_v23  ;;  %v1827_v6 = vadd.f32 %v3220_v17, %v1809_v21 }
 0x511   : > { %1843 = vst.msk [vmem:[%s3228_s28 + $0x20] sm:$0xff] %vm1450_vm6, %v1827_v6 }
 0x52d   : > { %v1567_v55 = vpop.xlane.xlu2 %1566 }
 0x52e   : > { %v1601_v51 = vmul.f32 0.125, %v1567_v55 }
 0x530   : > { %v1617_v56 = vadd.f32 1e-05, %v1601_v51 }
 0x532   : > { %2164 = vrsqrt.f32 %v1617_v56  ;;  %vm1693_vm11 = vweird.f32 %v1617_v56 }
 0x535   : > { %v1570_v19 = vpop.xlane.xlu0 %1569 }
 0x536   : > { %v1602_v1 = vmul.f32 0.125, %v1570_v19 }
 0x538   : > { %v2165_v24 = vpop.eup %2164  ;;  %v1618_v2 = vadd.f32 1e-05, %v1602_v1 }
 0x539   : > { %v1688_v5 = vmul.f32 %v2165_v24, %v1617_v56  ;;  %vm1694_vm10 = vweird.f32 %v2165_v24 }
 0x53a   : > { %2166 = vrsqrt.f32 %v1618_v2  ;;  %vm1695_vm12 = vmor %vm1693_vm11, %vm1694_vm10  ;;  %vm1703_vm14 = vweird.f32 %v1618_v2 }
 0x53b   : > { %v1689_v11 = vmul.f32 %v2165_v24, %v1688_v5 }
 0x53d   : > { %v1690_v12 = vmul.f32 0.5, %v1689_v11 }
 0x53f   : > { %v1573_v46 = vpop.xlane.xlu1 %1572  ;;  %v1691_v33 = vsub.f32 1.5, %v1690_v12 }
 0x540   : > { %v1603_v27 = vmul.f32 0.125, %v1573_v46  ;;  %v2167_v3 = vpop.eup %2166 }
 0x541   : > { %v1692_v14 = vmul.f32 %v2165_v24, %v1691_v33  ;;  %v1698_v10 = vmul.f32 %v2167_v3, %v1618_v2  ;;  %vm1704_vm13 = vweird.f32 %v2167_v3 }
 0x542   : > { %v1619_v13 = vadd.f32 1e-05, %v1603_v27  ;;  %vm1705_vm15 = vmor %vm1703_vm14, %vm1704_vm13 }
 0x543   : > { %v1696_v20 = vsel %vm1695_vm12, %v2165_v24, %v1692_v14  ;;  %v1699_v62 = vmul.f32 %v2167_v3, %v1698_v10 }
 0x544   : > { %2168 = vrsqrt.f32 %v1619_v13  ;;  %v1793_v15 = vmul.f32 %v1696_v20, %v3142_v39  ;;  %vm1713_vm2 = vweird.f32 %v1619_v13 }
 0x545   : > { %v1700_v43 = vmul.f32 0.5, %v1699_v62 }
 0x546   : > { %v1811_v26 = vmul.f32 %v3212_v31, %v1793_v15 }
 0x547   : > { %v1576_v35 = vpop.xlane.xlu2 %1575  ;;  %v1701_v34 = vsub.f32 1.5, %v1700_v43 }
 0x548   : > { %v1604_v38 = vmul.f32 0.125, %v1576_v35  ;;  %v1829_v45 = vadd.f32 %v3220_v17, %v1811_v26 }
 0x549   : > { %v1702_v60 = vmul.f32 %v2167_v3, %v1701_v34 }
 0x54a   : > { %v2169_v29 = vpop.eup %2168  ;;  %v1620_v48 = vadd.f32 1e-05, %v1604_v38  ;;  %1845 = vst.msk [vmem:[%s3228_s28 + $0x30] sm:$0xff] %vm1450_vm6, %v1829_v45 }
 0x54b   : > { %v1708_v16 = vmul.f32 %v2169_v29, %v1619_v13  ;;  %v1706_v36 = vsel %vm1705_vm15, %v2167_v3, %v1702_v60  ;;  %vm1714_vm0 = vweird.f32 %v2169_v29 }
 0x54c   : > { %2170 = vrsqrt.f32 %v1620_v48  ;;  %v1794_v39 = vmul.f32 %v1706_v36, %v3148_v54  ;;  %vm1715_vm3 = vmor %vm1713_vm2, %vm1714_vm0  ;;  %vm1723_vm5 = vweird.f32 %v1620_v48 }
 0x54d   : > { %v1709_v41 = vmul.f32 %v2169_v29, %v1708_v16 }
 0x54e   : > { %v1812_v8 = vmul.f32 %v3212_v31, %v1794_v39 }
 0x54f   : > { %v1710_v53 = vmul.f32 0.5, %v1709_v41  ;;  %v1585_v40 = vpop.xlane.xlu2 %1584  ;;  %v1579_v37 = vpop.xlane.xlu0 %1578 }
 0x550   : > { %v1607_v28 = vmul.f32 0.125, %v1585_v40  ;;  %v1605_v18 = vmul.f32 0.125, %v1579_v37  ;;  %v1830_v32 = vadd.f32 %v3220_v17, %v1812_v8 }
 0x551   : > { %v1711_v0 = vsub.f32 1.5, %v1710_v53 }
 0x552   : > { %v2171_v7 = vpop.eup %2170  ;;  %v1623_v9 = vadd.f32 1e-05, %v1607_v28  ;;  %v3270_v59 = vadd.f32 1e-05, %v1605_v18  ;;  %1846 = vst.msk [vmem:[%s3228_s28 + $0x38] sm:$0xff] %vm1450_vm6, %v1830_v32 }
 0x553   : > { %v1712_v57 = vmul.f32 %v2169_v29, %v1711_v0  ;;  %v1718_v54 = vmul.f32 %v2171_v7, %v1620_v48  ;;  %vm1724_vm4 = vweird.f32 %v2171_v7 }
 0x554   : > { %2172 = vrsqrt.f32 %v1623_v9  ;;  %vm1725_vm7 = vmor %vm1723_vm5, %vm1724_vm4  ;;  %vm1753_vm9 = vweird.f32 %v1623_v9  ;;  %vm1733_vm11 = vweird.f32 %v3270_v59 }
 0x555   : > { %v1716_v52 = vsel %vm1715_vm3, %v2169_v29, %v1712_v57  ;;  %v1719_v22 = vmul.f32 %v2171_v7, %v1718_v54  ;;  %2174 = vrsqrt.f32 %v3270_v59 }
 0x556   : > { %v1795_v42 = vmul.f32 %v1716_v52, %v3154_v47 }
 0x557   : > { %v1720_v25 = vmul.f32 0.5, %v1719_v22  ;;  %v1582_v23 = vpop.xlane.xlu1 %1581  ;;  %v1588_v44 = vpop.xlane.xlu0 %1587 }
 0x558   : > { %v1813_v21 = vmul.f32 %v3212_v31, %v1795_v42  ;;  %v1606_v6 = vmul.f32 0.125, %v1582_v23  ;;  %v1608_v55 = vmul.f32 0.125, %v1588_v44 }
 0x559   : > { %v1721_v51 = vsub.f32 1.5, %v1720_v25 }
 0x55a   : > { %v2173_v56 = vpop.eup %2172  ;;  %v1831_v19 = vadd.f32 %v3220_v17, %v1813_v21  ;;  %v3278_v1 = vadd.f32 1e-05, %v1606_v6  ;;  %v3280_v24 = vadd.f32 1e-05, %v1608_v55 }
 0x55b   : > { %v2175_v2 = vpop.eup %2174  ;;  %v1722_v5 = vmul.f32 %v2171_v7, %v1721_v51  ;;  %v1748_v47 = vmul.f32 %v2173_v56, %v1623_v9  ;;  %vm1754_vm1 = vweird.f32 %v2173_v56 }
 0x55c   : > { %1847 = vst.msk [vmem:[%s3228_s28 + $0x40] sm:$0xff] %vm1450_vm6, %v1831_v19  ;;  %v1728_v12 = vmul.f32 %v2175_v2, %v3270_v59  ;;  %2176 = vrsqrt.f32 %v3278_v1  ;;  %vm1734_vm8 = vweird.f32 %v2175_v2  ;;  %vm1755_vm10 = vmor %vm1753_vm9, %vm1754_vm1  ;;  %vm1743_vm15 = vweird.f32 %v3278_v1 }
 0x55d   : > { %v1594_v11 = vpop.xlane.xlu2 %1593  ;;  %v1726_v46 = vsel %vm1725_vm7, %v2171_v7, %v1722_v5  ;;  %v1749_v33 = vmul.f32 %v2173_v56, %v1748_v47  ;;  %2178 = vrsqrt.f32 %v3280_v24  ;;  %vm1735_vm12 = vmor %vm1733_vm11, %vm1734_vm8  ;;  %vm1763_vm2 = vweird.f32 %v3280_v24 }
 0x55e   : > { %v1796_v27 = vmul.f32 %v1726_v46, %v3160_v50  ;;  %v1729_v3 = vmul.f32 %v2175_v2, %v1728_v12  ;;  %v1610_v14 = vmul.f32 0.125, %v1594_v11 }
 0x55f   : > { %v1750_v10 = vmul.f32 0.5, %v1749_v33  ;;  %v1591_v13 = vpop.xlane.xlu1 %1590 }
 0x560   : > { %v1814_v20 = vmul.f32 %v3212_v31, %v1796_v27  ;;  %v1730_v62 = vmul.f32 0.5, %v1729_v3  ;;  %v3289_v15 = vadd.f32 1e-05, %v1610_v14  ;;  %v1609_v43 = vmul.f32 0.125, %v1591_v13 }
 0x561   : > { %v1751_v26 = vsub.f32 1.5, %v1750_v10 }
 0x562   : > { %v2177_v35 = vpop.eup %2176  ;;  %v1832_v34 = vadd.f32 %v3220_v17, %v1814_v20  ;;  %v1731_v38 = vsub.f32 1.5, %v1730_v62  ;;  %2180 = vrsqrt.f32 %v3289_v15  ;;  %v1625_v60 = vadd.f32 1e-05, %v1609_v43 }
 0x563   : > { %v2179_v50 = vpop.eup %2178  ;;  %v1752_v45 = vmul.f32 %v2173_v56, %v1751_v26  ;;  %v1738_v29 = vmul.f32 %v2177_v35, %v3278_v1  ;;  %vm1744_vm13 = vweird.f32 %v2177_v35  ;;  %vm1783_vm5 = vweird.f32 %v3289_v15 }
 0x564   : > { %1848 = vst.msk [vmem:[%s3228_s28 + $0x48] sm:$0xff] %vm1450_vm6, %v1832_v34  ;;  %v1732_v48 = vmul.f32 %v2175_v2, %v1731_v38  ;;  %v1758_v16 = vmul.f32 %v2179_v50, %v3280_v24  ;;  %2182 = vrsqrt.f32 %v1625_v60  ;;  %vm1764_vm14 = vweird.f32 %v2179_v50  ;;  %vm1745_vm0 = vmor %vm1743_vm15, %vm1744_vm13 }
 0x565   : > { %v1756_v36 = vsel %vm1755_vm10, %v2173_v56, %v1752_v45  ;;  %v1739_v39 = vmul.f32 %v2177_v35, %v1738_v29  ;;  %vm1765_vm3 = vmor %vm1763_vm2, %vm1764_vm14  ;;  %vm1773_vm8 = vweird.f32 %v1625_v60 }
 0x566   : > { %v1799_v41 = vmul.f32 %v1756_v36, %v3166_v4  ;;  %v1736_v8 = vsel %vm1735_vm12, %v2175_v2, %v1732_v48  ;;  %v1759_v53 = vmul.f32 %v2179_v50, %v1758_v16 }
 0x567   : > { %v1797_v40 = vmul.f32 %v1736_v8, %v3169_v61  ;;  %v1740_v37 = vmul.f32 0.5, %v1739_v39 }
 0x568   : > { %v2181_v28 = vpop.eup %2180  ;;  %v1817_v18 = vmul.f32 %v3212_v31, %v1799_v41  ;;  %v1760_v32 = vmul.f32 0.5, %v1759_v53 }
 0x569   : > { %v1815_v0 = vmul.f32 %v3212_v31, %v1797_v40  ;;  %v1741_v7 = vsub.f32 1.5, %v1740_v37  ;;  %v1778_v9 = vmul.f32 %v2181_v28, %v3289_v15  ;;  %vm1784_vm4 = vweird.f32 %v2181_v28 }
 0x56a   : > { %v1835_v59 = vadd.f32 %v3220_v17, %v1817_v18  ;;  %v1761_v4 = vsub.f32 1.5, %v1760_v32  ;;  %v2183_v57 = vpop.eup %2182  ;;  %vm1785_vm7 = vmor %vm1783_vm5, %vm1784_vm4 }
 0x56b   : > { %v1833_v61 = vadd.f32 %v3220_v17, %v1815_v0  ;;  %v1742_v54 = vmul.f32 %v2177_v35, %v1741_v7  ;;  %v1779_v52 = vmul.f32 %v2181_v28, %v1778_v9  ;;  %v1768_v42 = vmul.f32 %v2183_v57, %v1625_v60 }
 0x56c   : > { %1851 = vst.msk [vmem:[%s3228_s28 + $0x60] sm:$0xff] %vm1450_vm6, %v1835_v59  ;;  %v1762_v22 = vmul.f32 %v2179_v50, %v1761_v4  ;;  %vm1774_vm1 = vweird.f32 %v2183_v57 }
 0x56d   : > { %1849 = vst.msk [vmem:[%s3228_s28 + $0x50] sm:$0xff] %vm1450_vm6, %v1833_v61  ;;  %v1746_v25 = vsel %vm1745_vm0, %v2177_v35, %v1742_v54  ;;  %v1780_v23 = vmul.f32 0.5, %v1779_v52  ;;  %v1769_v6 = vmul.f32 %v2183_v57, %v1768_v42  ;;  %vm1775_vm9 = vmor %vm1773_vm8, %vm1774_vm1 }
 0x56e   : > { %v1798_v44 = vmul.f32 %v1746_v25, %v3181_v58  ;;  %v1766_v21 = vsel %vm1765_vm3, %v2179_v50, %v1762_v22 }
 0x56f   : > { %v1800_v55 = vmul.f32 %v1766_v21, %v3178_v63  ;;  %v1781_v51 = vsub.f32 1.5, %v1780_v23  ;;  %v1770_v19 = vmul.f32 0.5, %v1769_v6 }
 0x570   : > { %v1816_v56 = vmul.f32 %v3212_v31, %v1798_v44 }
 0x571   : > { %v1818_v1 = vmul.f32 %v3212_v31, %v1800_v55  ;;  %v1782_v24 = vmul.f32 %v2181_v28, %v1781_v51  ;;  %v1771_v58 = vsub.f32 1.5, %v1770_v19 }
 0x572   : > { %v1834_v2 = vadd.f32 %v3220_v17, %v1816_v56 }
 0x573   : > { %v1836_v63 = vadd.f32 %v3220_v17, %v1818_v1  ;;  %v1786_v5 = vsel %vm1785_vm7, %v2181_v28, %v1782_v24  ;;  %v1772_v11 = vmul.f32 %v2183_v57, %v1771_v58 }
 0x574   : > { %1850 = vst.msk [vmem:[%s3228_s28 + $0x58] sm:$0xff] %vm1450_vm6, %v1834_v2  ;;  %v1802_v47 = vmul.f32 %v1786_v5, %v3188_v49 }
 0x575   : > { %1852 = vst.msk [vmem:[%s3228_s28 + $0x68] sm:$0xff] %vm1450_vm6, %v1836_v63  ;;  %v1776_v46 = vsel %vm1775_vm9, %v2183_v57, %v1772_v11 }
 0x576   : > { %v1820_v12 = vmul.f32 %v3212_v31, %v1802_v47  ;;  %v1801_v33 = vmul.f32 %v1776_v46, %v3195_v30 }
 0x578   : > { %v1838_v27 = vadd.f32 %v3220_v17, %v1820_v12  ;;  %v1819_v3 = vmul.f32 %v3212_v31, %v1801_v33 }
 0x57a   : > { %1854 = vst.msk [vmem:[%s3228_s28 + $0x78] sm:$0xff] %vm1450_vm6, %v1838_v27  ;;  %v1837_v14 = vadd.f32 %v3220_v17, %v1819_v3 }
 0x57c   : > { %1853 = vst.msk [vmem:[%s3228_s28 + $0x70] sm:$0xff] %vm1450_vm6, %v1837_v14 }
 0x57d PF: > { %s17_s24 = sadd.s32 1, %s2190_s24  }
 0x57e   : > { %p14_p4 = scmp.ge.s32.totalorder %s17_s24, 4  }
 0x580   :  { %16 = sbr.rel (!%p14_p4) target bundleno = 1 (0x1), region = 78 }

</bundles_post_ra>
